<compile_context>
chip_gen: v7x
topology: tpu7x:2x2x1
jax: 0.10.0
libtpu: 0.0.40
codegen_flags: <defaults>
</compile_context>

<pallas_src>
import numpy as np
import jax
import jax.numpy as jnp
from jax import lax
from jax.experimental import pallas as pl
from jax.experimental.pallas import tpu as pltpu


# ----------------------------------------------------------------------------
# Pallas kernel: `batch_block` images per grid step.
# ----------------------------------------------------------------------------
def soft_attn_kernel(x_ref, w0_ref, a1_ref, b1_ref, a2_ref, b2_ref, sp_ref,
                     wc1_ref, tc1_ref, wc2_ref, tc2_ref, wf_ref, tf_ref, o_ref):
    f32 = jnp.float32
    x = x_ref[...]                                     # (B, H, W, Cp) float32
    B, H, W, Cp = x.shape
    HW = H * W
    Ho = a1_ref.shape[1]
    Wo = b1_ref.shape[2]

    # ---------------- SpatialAttn ----------------
    # conv0 (1x1, C -> 1): per-pixel channel reduction (VPU multiply + lane reduce).
    s0 = jnp.sum(x * w0_ref[...], axis=-1)             # (B, H, W)

    a1 = a1_ref[...]; b1 = b1_ref[...]                 # (3, Ho, H), (3, W, Wo)
    a2 = a2_ref[...]; b2 = b2_ref[...]                 # (3, H, Ho), (3, Wo, W)
    t1 = sp_ref[0]                                     # conv1-BN shift (scale folded)
    t2 = sp_ref[1]                                     # conv2-BN shift (scale folded)

    spatial_rows = []
    for b in range(B):                                 # B is a small static constant
        s0b = s0[b]                                    # (H, W)
        # conv1: 3x3 / stride 2 / pad 1 as 3 separable (row-shift, col-Toeplitz)
        # operators with the stride-2 decimation folded in.
        y1 = jnp.zeros((Ho, Wo), f32)
        for r in range(3):
            y1 = y1 + jnp.dot(jnp.dot(a1[r], s0b, preferred_element_type=f32),
                              b1[r], preferred_element_type=f32)
        y1 = jnp.maximum(y1 + t1, 0.0)                 # BN shift + ReLU
        # align_corners bilinear upsample fused with conv2 (3x3 / pad 1) + BN + ReLU.
        sp = jnp.zeros((H, W), f32)
        for r in range(3):
            sp = sp + jnp.dot(jnp.dot(a2[r], y1, preferred_element_type=f32),
                              b2[r], preferred_element_type=f32)
        spatial_rows.append(jnp.maximum(sp + t2, 0.0)[None])
    spatial = jnp.concatenate(spatial_rows, axis=0)    # (B, H, W)

    # ---------------- ChanAttn (squeeze-excite), kept off the MXU ----------------
    gap = jnp.mean(x.reshape(B, HW, Cp), axis=1)       # (B, Cp)  global average pool
    h = jnp.sum(gap[:, None, :] * wc1_ref[...][None, :, :], axis=-1)   # (B, C16)
    h = jnp.maximum(h + tc1_ref[...], 0.0)
    ch = jnp.sum(h[:, :, None] * wc2_ref[...][None, :, :], axis=1)     # (B, Cp)
    channel = jnp.maximum(ch + tc2_ref[...], 0.0)

    # -------- combine: sigmoid(BN(conv1x1(spatial * channel))) --------
    m = spatial[:, :, :, None] * channel[:, None, None, :]             # (B, H, W, Cp)
    m = m.reshape(B * HW, Cp).astype(jnp.bfloat16)
    z = jnp.dot(m, wf_ref[...], preferred_element_type=f32)            # (B*HW, Cp) MXU bf16
    z = z + tf_ref[...]
    out = pl.reciprocal(1.0 + jnp.exp(-z), approx=True)                # sigmoid via EUP
    o_ref[...] = out.reshape(B, H, W, Cp).astype(o_ref.dtype)


# ----------------------------------------------------------------------------
# Host-side operator builders (all O(H^2 + W^2), plain JAX / numpy glue).
# ----------------------------------------------------------------------------
def bilinear_matrix(n_in, n_out):
    """1-D bilinear interpolation matrix (align_corners=True), shape (n_out, n_in)."""
    assert n_in >= 2 and n_out >= 2, "bilinear upsample needs sizes >= 2"
    i = jnp.arange(n_out, dtype=jnp.float32)
    src = i * (n_in - 1) / (n_out - 1)
    i0 = jnp.clip(jnp.floor(src).astype(jnp.int32), 0, n_in - 2)
    frac = src - i0.astype(jnp.float32)
    M = jnp.zeros((n_out, n_in), jnp.float32)
    M = M.at[jnp.arange(n_out), i0].add(1.0 - frac)
    M = M.at[jnp.arange(n_out), i0 + 1].add(frac)
    return M


def shift_matrix(n, k):
    """(n, n) operator: (S @ v)[i] = v[i + k], zero outside the boundary."""
    return jnp.asarray(np.eye(n, k=k, dtype=np.float32))


def decimation_matrix(n_out, n_in):
    """(n_out, n_in) stride-2 decimation: (D @ v)[i] = v[2 i]."""
    M = np.zeros((n_out, n_in), np.float32)
    M[np.arange(n_out), 2 * np.arange(n_out)] = 1.0
    return jnp.asarray(M)


def conv1d_operator(n, taps):
    """(n, n) operator for a 3-tap 1-D correlation with zero padding 1."""
    return (taps[0] * shift_matrix(n, -1)
            + taps[1] * shift_matrix(n, 0)
            + taps[2] * shift_matrix(n, 1))


def make_params(key, C):
    """Deterministic synthetic parameters (kaiming-ish convs, folded eval-mode BN)."""
    C16 = C // 16
    ks = jax.random.split(key, 11)

    def kaiming(k, shape, fan_in):
        return jax.random.normal(k, shape, jnp.float32) * jnp.sqrt(2.0 / fan_in)

    def bn_fold(k, n):
        k1, k2, k3, k4 = jax.random.split(k, 4)
        gamma = 1.0 + 0.1 * jax.random.normal(k1, (n,), jnp.float32)
        beta = 0.1 * jax.random.normal(k2, (n,), jnp.float32)
        rmean = 0.1 * jax.random.normal(k3, (n,), jnp.float32)
        rvar = 1.0 + 0.1 * jax.random.uniform(k4, (n,), jnp.float32)
        scale = gamma / jnp.sqrt(rvar + 1e-5)
        shift = beta - rmean * scale
        return scale, shift

    p = {}
    p["w0"] = kaiming(ks[0], (C,), C)                 # SpatialAttn.conv0 (1,C,1,1)
    p["w1"] = kaiming(ks[1], (3, 3), 9)               # SpatialAttn.conv1 (1,1,3,3)
    s1, t1 = bn_fold(ks[2], 1)
    p["s1"], p["t1"] = s1[0], t1[0]
    p["w2"] = kaiming(ks[3], (3, 3), 9)               # SpatialAttn.conv2 (1,1,3,3)
    s2, t2 = bn_fold(ks[4], 1)
    p["s2"], p["t2"] = s2[0], t2[0]
    p["wc1"] = kaiming(ks[5], (C16, C, 1, 1), C)      # ChanAttn conv1
    p["sc1"], p["tc1"] = bn_fold(ks[6], C16)
    p["wc2"] = kaiming(ks[7], (C, C16, 1, 1), C16)    # ChanAttn conv2
    p["sc2"], p["tc2"] = bn_fold(ks[8], C)
    p["wf"] = kaiming(ks[9], (C, C, 1, 1), C)         # SoftAttn.conv (C,C,1,1)
    p["sf"], p["tf"] = bn_fold(ks[10], C)
    return p


# ----------------------------------------------------------------------------
# Wrapper around pallas_call.
# ----------------------------------------------------------------------------
def soft_attn(x_nchw, p, *, batch_block=None):
    N, C, H, W = x_nchw.shape
    assert C % 16 == 0, "in_chan must be divisible by 16"
    assert H % 2 == 0 and W % 2 == 0 and H >= 4 and W >= 4
    C16 = C // 16
    Ho, Wo = H // 2, W // 2
    Cp = ((C + 127) // 128) * 128          # pad channel axis -> lane-dense (x128)

    # Images per grid step: amortize per-step overhead, but keep >= 2 grid
    # steps when possible so a 2-TensorCore chip (v7x) can split the batch axis.
    if batch_block is None:
        batch_block = 1
        for cand in (8, 4, 2):
            if N % cand == 0 and N // cand >= 2:
                batch_block = cand
                break
    assert N % batch_block == 0

    # ---- spatial branch operators: BN scales folded, separable, O(H^2 + W^2) ----
    w1e = p["w1"] * p["s1"]                # conv1 weight with its BN scale folded in
    w2e = p["w2"] * p["s2"]                # conv2 weight with its BN scale folded in
    Dh = decimation_matrix(Ho, H)
    Dw = decimation_matrix(Wo, W)
    Uh = bilinear_matrix(Ho, H)            # (H, Ho) align_corners=True
    Uw = bilinear_matrix(Wo, W)            # (W, Wo)
    A1 = jnp.stack([Dh @ shift_matrix(H, r - 1) for r in range(3)])          # (3, Ho, H)
    B1 = jnp.stack([(Dw @ conv1d_operator(W, w1e[r])).T for r in range(3)])  # (3, W, Wo)
    A2 = jnp.stack([shift_matrix(H, r - 1) @ Uh for r in range(3)])          # (3, H, Ho)
    B2 = jnp.stack([(conv1d_operator(W, w2e[r]) @ Uw).T for r in range(3)])  # (3, Wo, W)
    sp_shift = jnp.stack([p["t1"], p["t2"]]).astype(jnp.float32)             # SMEM scalars

    def pad_last(a, target):
        extra = target - a.shape[-1]
        if extra == 0:
            return a
        return jnp.pad(a, [(0, 0)] * (a.ndim - 1) + [(0, extra)])

    # ---- channel / fusion weights: BN scales folded, zero-padded to Cp ----
    w0_row = pad_last(p["w0"].reshape(1, C), Cp)                               # (1, Cp)
    wc1k = pad_last(p["wc1"][:, :, 0, 0] * p["sc1"][:, None], Cp)              # (C16, Cp)
    tc1 = p["tc1"].reshape(1, C16)
    wc2k = pad_last((p["wc2"][:, :, 0, 0] * p["sc2"][:, None]).T, Cp)          # (C16, Cp)
    tc2 = pad_last(p["tc2"].reshape(1, C), Cp)
    wfk = (p["wf"][:, :, 0, 0] * p["sf"][:, None]).T                           # (C, C) [cin, cout]
    wfk = jnp.pad(wfk, ((0, Cp - C), (0, Cp - C))).astype(jnp.bfloat16)        # bf16 MXU operand
    tf = pad_last(p["tf"].reshape(1, C), Cp)

    x_nhwc = pad_last(jnp.transpose(x_nchw, (0, 2, 3, 1)).astype(jnp.float32), Cp)

    def full(shape):
        return pl.BlockSpec(shape, lambda n, _nd=len(shape): (0,) * _nd)

    out_nhwc = pl.pallas_call(
        soft_attn_kernel,
        out_shape=jax.ShapeDtypeStruct((N, H, W, Cp), jnp.float32),
        grid_spec=pltpu.PrefetchScalarGridSpec(
            num_scalar_prefetch=0,
            grid=(N // batch_block,),
            in_specs=[
                pl.BlockSpec((batch_block, H, W, Cp), lambda n: (n, 0, 0, 0)),  # x
                full((1, Cp)),                                      # conv0 weights
                full((3, Ho, H)),                                   # conv1 row operators
                full((3, W, Wo)),                                   # conv1 col operators (+decim)
                full((3, H, Ho)),                                   # conv2 row operators (+upsample)
                full((3, Wo, W)),                                   # conv2 col operators (+upsample)
                pl.BlockSpec(memory_space=pltpu.MemorySpace.SMEM),  # spatial BN shifts
                full((C16, Cp)),                                    # ChanAttn W1 (scale folded)
                full((1, C16)),                                     # ChanAttn BN1 shift
                full((C16, Cp)),                                    # ChanAttn W2 (scale folded)
                full((1, Cp)),                                      # ChanAttn BN2 shift
                full((Cp, Cp)),                                     # fuse conv 1x1 (bf16, scale folded)
                full((1, Cp)),                                      # fuse BN shift
            ],
            out_specs=pl.BlockSpec((batch_block, H, W, Cp), lambda n: (n, 0, 0, 0)),
        ),
        compiler_params=pltpu.CompilerParams(
            dimension_semantics=("parallel",),
            vmem_limit_bytes=32 * 1024 * 1024,   # tiny footprint; safe on v7x's 64 MiB VMEM
        ),
    )(x_nhwc, w0_row, A1, B1, A2, B2, sp_shift,
      wc1k, tc1, wc2k, tc2, wfk, tf)

    # Drop the zero-padded channels, back to NCHW.
    return jnp.transpose(out_nhwc[..., :C], (0, 3, 1, 2))


# ----------------------------------------------------------------------------
# Pure-JAX NCHW reference (mirrors the PyTorch module, eval-mode BN).
# ----------------------------------------------------------------------------
def soft_attn_reference(x, p):
    N, C, H, W = x.shape

    def conv(inp, w, s, pad):
        return lax.conv_general_dilated(
            inp, w, (s, s), [(pad, pad), (pad, pad)],
            dimension_numbers=("NCHW", "OIHW", "NCHW"))

    # SpatialAttn
    s0 = conv(x, p["w0"].reshape(1, C, 1, 1), 1, 0)
    y1 = conv(s0, p["w1"].reshape(1, 1, 3, 3), 2, 1)
    y1 = jnp.maximum(y1 * p["s1"] + p["t1"], 0.0)
    Ho, Wo = y1.shape[2], y1.shape[3]
    Uh, Uw = bilinear_matrix(Ho, 2 * Ho), bilinear_matrix(Wo, 2 * Wo)
    up = jnp.einsum("ab,ncbd,ed->ncae", Uh, y1, Uw)      # bilinear, align_corners=True
    y2 = conv(up, p["w2"].reshape(1, 1, 3, 3), 1, 1)
    spatial = jnp.maximum(y2 * p["s2"] + p["t2"], 0.0)
    # ChanAttn
    gap = jnp.mean(x, axis=(2, 3), keepdims=True)
    h = conv(gap, p["wc1"], 1, 0)
    h = jnp.maximum(h * p["sc1"].reshape(1, -1, 1, 1) + p["tc1"].reshape(1, -1, 1, 1), 0.0)
    ch = conv(h, p["wc2"], 1, 0)
    channel = jnp.maximum(ch * p["sc2"].reshape(1, -1, 1, 1) + p["tc2"].reshape(1, -1, 1, 1), 0.0)
    # combine
    z = conv(spatial * channel, p["wf"], 1, 0)
    z = z * p["sf"].reshape(1, -1, 1, 1) + p["tf"].reshape(1, -1, 1, 1)
    return jax.nn.sigmoid(z)


if __name__ == "__main__":
    N, C, H, W = 2, 32, 16, 16           # in_chan must be divisible by 16
    key = jax.random.PRNGKey(0)
    kx, kp = jax.random.split(key)
    x = jax.random.normal(kx, (N, C, H, W), jnp.float32)
    params = make_params(kp, C)

    out = jax.block_until_ready(soft_attn(x, params))

    ref = soft_attn_reference(x, params)
    np.testing.assert_allclose(np.asarray(out), np.asarray(ref), atol=2e-2, rtol=2e-2)
    print("KERNEL_OK")
</pallas_src>

<mosaic_0001>
module attributes {stable_mosaic.version = 11 : i64} {
  func.func @soft_attn_kernel(%arg0: i32, %arg1: memref<1x16x16x128xf32, #tpu.memory_space<vmem>>, %arg2: memref<1x128xf32, #tpu.memory_space<vmem>>, %arg3: memref<3x8x16xf32, #tpu.memory_space<vmem>>, %arg4: memref<3x16x8xf32, #tpu.memory_space<vmem>>, %arg5: memref<3x16x8xf32, #tpu.memory_space<vmem>>, %arg6: memref<3x8x16xf32, #tpu.memory_space<vmem>>, %arg7: memref<2xf32, #tpu.memory_space<smem>>, %arg8: memref<2x128xf32, #tpu.memory_space<vmem>>, %arg9: memref<1x2xf32, #tpu.memory_space<vmem>>, %arg10: memref<2x128xf32, #tpu.memory_space<vmem>>, %arg11: memref<1x128xf32, #tpu.memory_space<vmem>>, %arg12: memref<128x128xbf16, #tpu.memory_space<vmem>>, %arg13: memref<1x128xf32, #tpu.memory_space<vmem>>, %arg14: memref<1x16x16x128xf32, #tpu.memory_space<vmem>>) attributes {dimension_semantics = [#tpu.dimension_semantics<parallel>], iteration_bounds = array<i64: 2>, scalar_prefetch = 0 : i64, scratch_operands = 0 : i64, tpu.core_type = #tpu.core_type<tc>, window_params = [{transform_indices = @transform_0, window_bounds = array<i64: 1, 16, 16, 128>}, {pipeline_mode = #tpu.pipeline_mode<synchronous>, transform_indices = @transform_1, window_bounds = array<i64: 1, 128>}, {pipeline_mode = #tpu.pipeline_mode<synchronous>, transform_indices = @transform_2, window_bounds = array<i64: 3, 8, 16>}, {pipeline_mode = #tpu.pipeline_mode<synchronous>, transform_indices = @transform_3, window_bounds = array<i64: 3, 16, 8>}, {pipeline_mode = #tpu.pipeline_mode<synchronous>, transform_indices = @transform_4, window_bounds = array<i64: 3, 16, 8>}, {pipeline_mode = #tpu.pipeline_mode<synchronous>, transform_indices = @transform_5, window_bounds = array<i64: 3, 8, 16>}, {transform_indices = @transform_6, window_bounds = array<i64: 2>}, {pipeline_mode = #tpu.pipeline_mode<synchronous>, transform_indices = @transform_7, window_bounds = array<i64: 2, 128>}, {pipeline_mode = #tpu.pipeline_mode<synchronous>, transform_indices = @transform_8, window_bounds = array<i64: 1, 2>}, {pipeline_mode = #tpu.pipeline_mode<synchronous>, transform_indices = @transform_9, window_bounds = array<i64: 2, 128>}, {pipeline_mode = #tpu.pipeline_mode<synchronous>, transform_indices = @transform_10, window_bounds = array<i64: 1, 128>}, {pipeline_mode = #tpu.pipeline_mode<synchronous>, transform_indices = @transform_11, window_bounds = array<i64: 128, 128>}, {pipeline_mode = #tpu.pipeline_mode<synchronous>, transform_indices = @transform_12, window_bounds = array<i64: 1, 128>}, {transform_indices = @transform_13, window_bounds = array<i64: 1, 16, 16, 128>}]} {
    %c0 = arith.constant 0 : index
    %c0_0 = arith.constant 0 : index
    %c0_1 = arith.constant 0 : index
    %c0_2 = arith.constant 0 : index
    %0 = vector.load %arg1[%c0, %c0_0, %c0_1, %c0_2] : memref<1x16x16x128xf32, #tpu.memory_space<vmem>>, vector<1x16x16x128xf32>
    %c0_3 = arith.constant 0 : index
    %c0_4 = arith.constant 0 : index
    %1 = vector.load %arg2[%c0_3, %c0_4] : memref<1x128xf32, #tpu.memory_space<vmem>>, vector<1x128xf32>
    %2 = vector.shape_cast %1 : vector<1x128xf32> to vector<1x1x1x128xf32>
    %3 = vector.broadcast %2 : vector<1x1x1x128xf32> to vector<1x16x16x128xf32>
    %4 = arith.mulf %0, %3 : vector<1x16x16x128xf32>
    %cst = arith.constant dense<0.000000e+00> : vector<1x16x16xf32>
    %5 = vector.multi_reduction <add>, %4, %cst [3] : vector<1x16x16x128xf32> to vector<1x16x16xf32>
    %c0_5 = arith.constant 0 : index
    %c0_6 = arith.constant 0 : index
    %c0_7 = arith.constant 0 : index
    %6 = vector.load %arg3[%c0_5, %c0_6, %c0_7] : memref<3x8x16xf32, #tpu.memory_space<vmem>>, vector<3x8x16xf32>
    %c0_8 = arith.constant 0 : index
    %c0_9 = arith.constant 0 : index
    %c0_10 = arith.constant 0 : index
    %7 = vector.load %arg4[%c0_8, %c0_9, %c0_10] : memref<3x16x8xf32, #tpu.memory_space<vmem>>, vector<3x16x8xf32>
    %c0_11 = arith.constant 0 : index
    %c0_12 = arith.constant 0 : index
    %c0_13 = arith.constant 0 : index
    %8 = vector.load %arg5[%c0_11, %c0_12, %c0_13] : memref<3x16x8xf32, #tpu.memory_space<vmem>>, vector<3x16x8xf32>
    %c0_14 = arith.constant 0 : index
    %c0_15 = arith.constant 0 : index
    %c0_16 = arith.constant 0 : index
    %9 = vector.load %arg6[%c0_14, %c0_15, %c0_16] : memref<3x8x16xf32, #tpu.memory_space<vmem>>, vector<3x8x16xf32>
    %c0_17 = arith.constant 0 : index
    %10 = memref.load %arg7[%c0_17] : memref<2xf32, #tpu.memory_space<smem>>
    %c1 = arith.constant 1 : index
    %11 = memref.load %arg7[%c1] : memref<2xf32, #tpu.memory_space<smem>>
    %12 = vector.shape_cast %5 : vector<1x16x16xf32> to vector<16x16xf32>
    %cst_18 = arith.constant 0.000000e+00 : f32
    %13 = vector.broadcast %cst_18 : f32 to vector<8x8xf32>
    %14 = vector.extract_strided_slice %6 {offsets = [0, 0, 0], sizes = [1, 8, 16], strides = [1, 1, 1]} : vector<3x8x16xf32> to vector<1x8x16xf32>
    %15 = vector.shape_cast %14 : vector<1x8x16xf32> to vector<8x16xf32>
    %cst_19 = arith.constant dense<0.000000e+00> : vector<8x16xf32>
    %16 = tpu.matmul %15, %12, %cst_19 {dimension_numbers = #tpu.dot_dimension_numbers<[1], [0], [0], [1], [0, 0, 1, 1], [], []>} : vector<8x16xf32>, vector<16x16xf32>, vector<8x16xf32> -> vector<8x16xf32>
    %17 = vector.extract_strided_slice %7 {offsets = [0, 0, 0], sizes = [1, 16, 8], strides = [1, 1, 1]} : vector<3x16x8xf32> to vector<1x16x8xf32>
    %18 = vector.shape_cast %17 : vector<1x16x8xf32> to vector<16x8xf32>
    %cst_20 = arith.constant dense<0.000000e+00> : vector<8x8xf32>
    %19 = tpu.matmul %16, %18, %cst_20 {dimension_numbers = #tpu.dot_dimension_numbers<[1], [0], [0], [1], [0, 0, 1, 1], [], []>} : vector<8x16xf32>, vector<16x8xf32>, vector<8x8xf32> -> vector<8x8xf32>
    %20 = arith.addf %13, %19 : vector<8x8xf32>
    %21 = vector.extract_strided_slice %6 {offsets = [1, 0, 0], sizes = [1, 8, 16], strides = [1, 1, 1]} : vector<3x8x16xf32> to vector<1x8x16xf32>
    %22 = vector.shape_cast %21 : vector<1x8x16xf32> to vector<8x16xf32>
    %cst_21 = arith.constant dense<0.000000e+00> : vector<8x16xf32>
    %23 = tpu.matmul %22, %12, %cst_21 {dimension_numbers = #tpu.dot_dimension_numbers<[1], [0], [0], [1], [0, 0, 1, 1], [], []>} : vector<8x16xf32>, vector<16x16xf32>, vector<8x16xf32> -> vector<8x16xf32>
    %24 = vector.extract_strided_slice %7 {offsets = [1, 0, 0], sizes = [1, 16, 8], strides = [1, 1, 1]} : vector<3x16x8xf32> to vector<1x16x8xf32>
    %25 = vector.shape_cast %24 : vector<1x16x8xf32> to vector<16x8xf32>
    %cst_22 = arith.constant dense<0.000000e+00> : vector<8x8xf32>
    %26 = tpu.matmul %23, %25, %cst_22 {dimension_numbers = #tpu.dot_dimension_numbers<[1], [0], [0], [1], [0, 0, 1, 1], [], []>} : vector<8x16xf32>, vector<16x8xf32>, vector<8x8xf32> -> vector<8x8xf32>
    %27 = arith.addf %20, %26 : vector<8x8xf32>
    %28 = vector.extract_strided_slice %6 {offsets = [2, 0, 0], sizes = [1, 8, 16], strides = [1, 1, 1]} : vector<3x8x16xf32> to vector<1x8x16xf32>
    %29 = vector.shape_cast %28 : vector<1x8x16xf32> to vector<8x16xf32>
    %cst_23 = arith.constant dense<0.000000e+00> : vector<8x16xf32>
    %30 = tpu.matmul %29, %12, %cst_23 {dimension_numbers = #tpu.dot_dimension_numbers<[1], [0], [0], [1], [0, 0, 1, 1], [], []>} : vector<8x16xf32>, vector<16x16xf32>, vector<8x16xf32> -> vector<8x16xf32>
    %31 = vector.extract_strided_slice %7 {offsets = [2, 0, 0], sizes = [1, 16, 8], strides = [1, 1, 1]} : vector<3x16x8xf32> to vector<1x16x8xf32>
    %32 = vector.shape_cast %31 : vector<1x16x8xf32> to vector<16x8xf32>
    %cst_24 = arith.constant dense<0.000000e+00> : vector<8x8xf32>
    %33 = tpu.matmul %30, %32, %cst_24 {dimension_numbers = #tpu.dot_dimension_numbers<[1], [0], [0], [1], [0, 0, 1, 1], [], []>} : vector<8x16xf32>, vector<16x8xf32>, vector<8x8xf32> -> vector<8x8xf32>
    %34 = arith.addf %27, %33 : vector<8x8xf32>
    %35 = vector.broadcast %10 : f32 to vector<8x8xf32>
    %36 = arith.addf %34, %35 : vector<8x8xf32>
    %cst_25 = arith.constant 0.000000e+00 : f32
    %37 = vector.broadcast %cst_25 : f32 to vector<8x8xf32>
    %38 = arith.maximumf %36, %37 : vector<8x8xf32>
    %cst_26 = arith.constant 0.000000e+00 : f32
    %39 = vector.broadcast %cst_26 : f32 to vector<16x16xf32>
    %40 = vector.extract_strided_slice %8 {offsets = [0, 0, 0], sizes = [1, 16, 8], strides = [1, 1, 1]} : vector<3x16x8xf32> to vector<1x16x8xf32>
    %41 = vector.shape_cast %40 : vector<1x16x8xf32> to vector<16x8xf32>
    %cst_27 = arith.constant dense<0.000000e+00> : vector<16x8xf32>
    %42 = tpu.matmul %41, %38, %cst_27 {dimension_numbers = #tpu.dot_dimension_numbers<[1], [0], [0], [1], [0, 0, 1, 1], [], []>} : vector<16x8xf32>, vector<8x8xf32>, vector<16x8xf32> -> vector<16x8xf32>
    %43 = vector.extract_strided_slice %9 {offsets = [0, 0, 0], sizes = [1, 8, 16], strides = [1, 1, 1]} : vector<3x8x16xf32> to vector<1x8x16xf32>
    %44 = vector.shape_cast %43 : vector<1x8x16xf32> to vector<8x16xf32>
    %cst_28 = arith.constant dense<0.000000e+00> : vector<16x16xf32>
    %45 = tpu.matmul %42, %44, %cst_28 {dimension_numbers = #tpu.dot_dimension_numbers<[1], [0], [0], [1], [0, 0, 1, 1], [], []>} : vector<16x8xf32>, vector<8x16xf32>, vector<16x16xf32> -> vector<16x16xf32>
    %46 = arith.addf %39, %45 : vector<16x16xf32>
    %47 = vector.extract_strided_slice %8 {offsets = [1, 0, 0], sizes = [1, 16, 8], strides = [1, 1, 1]} : vector<3x16x8xf32> to vector<1x16x8xf32>
    %48 = vector.shape_cast %47 : vector<1x16x8xf32> to vector<16x8xf32>
    %cst_29 = arith.constant dense<0.000000e+00> : vector<16x8xf32>
    %49 = tpu.matmul %48, %38, %cst_29 {dimension_numbers = #tpu.dot_dimension_numbers<[1], [0], [0], [1], [0, 0, 1, 1], [], []>} : vector<16x8xf32>, vector<8x8xf32>, vector<16x8xf32> -> vector<16x8xf32>
    %50 = vector.extract_strided_slice %9 {offsets = [1, 0, 0], sizes = [1, 8, 16], strides = [1, 1, 1]} : vector<3x8x16xf32> to vector<1x8x16xf32>
    %51 = vector.shape_cast %50 : vector<1x8x16xf32> to vector<8x16xf32>
    %cst_30 = arith.constant dense<0.000000e+00> : vector<16x16xf32>
    %52 = tpu.matmul %49, %51, %cst_30 {dimension_numbers = #tpu.dot_dimension_numbers<[1], [0], [0], [1], [0, 0, 1, 1], [], []>} : vector<16x8xf32>, vector<8x16xf32>, vector<16x16xf32> -> vector<16x16xf32>
    %53 = arith.addf %46, %52 : vector<16x16xf32>
    %54 = vector.extract_strided_slice %8 {offsets = [2, 0, 0], sizes = [1, 16, 8], strides = [1, 1, 1]} : vector<3x16x8xf32> to vector<1x16x8xf32>
    %55 = vector.shape_cast %54 : vector<1x16x8xf32> to vector<16x8xf32>
    %cst_31 = arith.constant dense<0.000000e+00> : vector<16x8xf32>
    %56 = tpu.matmul %55, %38, %cst_31 {dimension_numbers = #tpu.dot_dimension_numbers<[1], [0], [0], [1], [0, 0, 1, 1], [], []>} : vector<16x8xf32>, vector<8x8xf32>, vector<16x8xf32> -> vector<16x8xf32>
    %57 = vector.extract_strided_slice %9 {offsets = [2, 0, 0], sizes = [1, 8, 16], strides = [1, 1, 1]} : vector<3x8x16xf32> to vector<1x8x16xf32>
    %58 = vector.shape_cast %57 : vector<1x8x16xf32> to vector<8x16xf32>
    %cst_32 = arith.constant dense<0.000000e+00> : vector<16x16xf32>
    %59 = tpu.matmul %56, %58, %cst_32 {dimension_numbers = #tpu.dot_dimension_numbers<[1], [0], [0], [1], [0, 0, 1, 1], [], []>} : vector<16x8xf32>, vector<8x16xf32>, vector<16x16xf32> -> vector<16x16xf32>
    %60 = arith.addf %53, %59 : vector<16x16xf32>
    %61 = vector.broadcast %11 : f32 to vector<16x16xf32>
    %62 = arith.addf %60, %61 : vector<16x16xf32>
    %cst_33 = arith.constant 0.000000e+00 : f32
    %63 = vector.broadcast %cst_33 : f32 to vector<16x16xf32>
    %64 = arith.maximumf %62, %63 : vector<16x16xf32>
    %65 = vector.shape_cast %64 : vector<16x16xf32> to vector<1x16x16xf32>
    %66 = vector.shape_cast %0 : vector<1x16x16x128xf32> to vector<1x256x128xf32>
    %cst_34 = arith.constant dense<0.000000e+00> : vector<1x128xf32>
    %67 = vector.multi_reduction <add>, %66, %cst_34 [1] : vector<1x256x128xf32> to vector<1x128xf32>
    %cst_35 = arith.constant 2.560000e+02 : f32
    %68 = vector.broadcast %cst_35 : f32 to vector<1x128xf32>
    %69 = arith.divf %67, %68 : vector<1x128xf32>
    %70 = vector.shape_cast %69 : vector<1x128xf32> to vector<1x1x128xf32>
    %c0_36 = arith.constant 0 : index
    %c0_37 = arith.constant 0 : index
    %71 = vector.load %arg8[%c0_36, %c0_37] : memref<2x128xf32, #tpu.memory_space<vmem>>, vector<2x128xf32>
    %72 = vector.shape_cast %71 : vector<2x128xf32> to vector<1x2x128xf32>
    %73 = vector.broadcast %70 : vector<1x1x128xf32> to vector<1x2x128xf32>
    %74 = arith.mulf %73, %72 : vector<1x2x128xf32>
    %cst_38 = arith.constant dense<0.000000e+00> : vector<1x2xf32>
    %75 = vector.multi_reduction <add>, %74, %cst_38 [2] : vector<1x2x128xf32> to vector<1x2xf32>
    %c0_39 = arith.constant 0 : index
    %c0_40 = arith.constant 0 : index
    %76 = vector.load %arg9[%c0_39, %c0_40] : memref<1x2xf32, #tpu.memory_space<vmem>>, vector<1x2xf32>
    %77 = arith.addf %75, %76 : vector<1x2xf32>
    %cst_41 = arith.constant 0.000000e+00 : f32
    %78 = vector.broadcast %cst_41 : f32 to vector<1x2xf32>
    %79 = arith.maximumf %77, %78 : vector<1x2xf32>
    %80 = vector.shape_cast %79 : vector<1x2xf32> to vector<1x2x1xf32>
    %c0_42 = arith.constant 0 : index
    %c0_43 = arith.constant 0 : index
    %81 = vector.load %arg10[%c0_42, %c0_43] : memref<2x128xf32, #tpu.memory_space<vmem>>, vector<2x128xf32>
    %82 = vector.shape_cast %81 : vector<2x128xf32> to vector<1x2x128xf32>
    %83 = vector.broadcast %80 : vector<1x2x1xf32> to vector<1x2x128xf32>
    %84 = arith.mulf %83, %82 : vector<1x2x128xf32>
    %cst_44 = arith.constant dense<0.000000e+00> : vector<1x128xf32>
    %85 = vector.multi_reduction <add>, %84, %cst_44 [1] : vector<1x2x128xf32> to vector<1x128xf32>
    %c0_45 = arith.constant 0 : index
    %c0_46 = arith.constant 0 : index
    %86 = vector.load %arg11[%c0_45, %c0_46] : memref<1x128xf32, #tpu.memory_space<vmem>>, vector<1x128xf32>
    %87 = arith.addf %85, %86 : vector<1x128xf32>
    %cst_47 = arith.constant 0.000000e+00 : f32
    %88 = vector.broadcast %cst_47 : f32 to vector<1x128xf32>
    %89 = arith.maximumf %87, %88 : vector<1x128xf32>
    %90 = vector.shape_cast %65 : vector<1x16x16xf32> to vector<1x16x16x1xf32>
    %91 = vector.shape_cast %89 : vector<1x128xf32> to vector<1x1x1x128xf32>
    %92 = vector.broadcast %90 : vector<1x16x16x1xf32> to vector<1x16x16x128xf32>
    %93 = vector.broadcast %91 : vector<1x1x1x128xf32> to vector<1x16x16x128xf32>
    %94 = arith.mulf %92, %93 : vector<1x16x16x128xf32>
    %95 = vector.shape_cast %94 : vector<1x16x16x128xf32> to vector<256x128xf32>
    %96 = arith.truncf %95 : vector<256x128xf32> to vector<256x128xbf16>
    %c0_48 = arith.constant 0 : index
    %c0_49 = arith.constant 0 : index
    %97 = vector.load %arg12[%c0_48, %c0_49] : memref<128x128xbf16, #tpu.memory_space<vmem>>, vector<128x128xbf16>
    %cst_50 = arith.constant dense<0.000000e+00> : vector<256x128xf32>
    %98 = tpu.matmul %96, %97, %cst_50 {dimension_numbers = #tpu.dot_dimension_numbers<[1], [0], [0], [1], [0, 0, 1, 1], [], []>} : vector<256x128xbf16>, vector<128x128xbf16>, vector<256x128xf32> -> vector<256x128xf32>
    %c0_51 = arith.constant 0 : index
    %c0_52 = arith.constant 0 : index
    %99 = vector.load %arg13[%c0_51, %c0_52] : memref<1x128xf32, #tpu.memory_space<vmem>>, vector<1x128xf32>
    %100 = vector.broadcast %99 : vector<1x128xf32> to vector<256x128xf32>
    %101 = arith.addf %98, %100 : vector<256x128xf32>
    %cst_53 = arith.constant 0.000000e+00 : f32
    %102 = vector.broadcast %cst_53 : f32 to vector<256x128xf32>
    %103 = arith.subf %102, %101 : vector<256x128xf32>
    %104 = math.exp %103 : vector<256x128xf32>
    %cst_54 = arith.constant 1.000000e+00 : f32
    %105 = vector.broadcast %cst_54 : f32 to vector<256x128xf32>
    %106 = arith.addf %105, %104 : vector<256x128xf32>
    %107 = tpu.reciprocal %106 {approx = true} : vector<256x128xf32> -> vector<256x128xf32>
    %108 = vector.shape_cast %107 : vector<256x128xf32> to vector<1x16x16x128xf32>
    %c0_55 = arith.constant 0 : index
    %c0_56 = arith.constant 0 : index
    %c0_57 = arith.constant 0 : index
    %c0_58 = arith.constant 0 : index
    %109 = vector.load %arg14[%c0_55, %c0_56, %c0_57, %c0_58] : memref<1x16x16x128xf32, #tpu.memory_space<vmem>>, vector<1x16x16x128xf32>
    tpu.vector_store %arg14[%c0_55, %c0_56, %c0_57, %c0_58], %108 {strides = array<i32>} : memref<1x16x16x128xf32, #tpu.memory_space<vmem>>, vector<1x16x16x128xf32>,
    return
  }
  func.func @transform_0(%arg0: i32) -> (i32, i32, i32, i32) {
    %c0_i32 = arith.constant 0 : i32
    %c0_i32_0 = arith.constant 0 : i32
    %c0_i32_1 = arith.constant 0 : i32
    %c0_i32_2 = arith.constant 0 : i32
    return %arg0, %c0_i32, %c0_i32_0, %c0_i32_1 : i32, i32, i32, i32
  }
  func.func @transform_1(%arg0: i32) -> (i32, i32) {
    %c0_i32 = arith.constant 0 : i32
    %c0_i32_0 = arith.constant 0 : i32
    %c0_i32_1 = arith.constant 0 : i32
    return %c0_i32, %c0_i32_0 : i32, i32
  }
  func.func @transform_2(%arg0: i32) -> (i32, i32, i32) {
    %c0_i32 = arith.constant 0 : i32
    %c0_i32_0 = arith.constant 0 : i32
    %c0_i32_1 = arith.constant 0 : i32
    %c0_i32_2 = arith.constant 0 : i32
    return %c0_i32, %c0_i32_0, %c0_i32_1 : i32, i32, i32
  }
  func.func @transform_3(%arg0: i32) -> (i32, i32, i32) {
    %c0_i32 = arith.constant 0 : i32
    %c0_i32_0 = arith.constant 0 : i32
    %c0_i32_1 = arith.constant 0 : i32
    %c0_i32_2 = arith.constant 0 : i32
    return %c0_i32, %c0_i32_0, %c0_i32_1 : i32, i32, i32
  }
  func.func @transform_4(%arg0: i32) -> (i32, i32, i32) {
    %c0_i32 = arith.constant 0 : i32
    %c0_i32_0 = arith.constant 0 : i32
    %c0_i32_1 = arith.constant 0 : i32
    %c0_i32_2 = arith.constant 0 : i32
    return %c0_i32, %c0_i32_0, %c0_i32_1 : i32, i32, i32
  }
  func.func @transform_5(%arg0: i32) -> (i32, i32, i32) {
    %c0_i32 = arith.constant 0 : i32
    %c0_i32_0 = arith.constant 0 : i32
    %c0_i32_1 = arith.constant 0 : i32
    %c0_i32_2 = arith.constant 0 : i32
    return %c0_i32, %c0_i32_0, %c0_i32_1 : i32, i32, i32
  }
  func.func @transform_6(%arg0: i32) -> i32 {
    %c0_i32 = arith.constant 0 : i32
    %c0_i32_0 = arith.constant 0 : i32
    return %c0_i32 : i32
  }
  func.func @transform_7(%arg0: i32) -> (i32, i32) {
    %c0_i32 = arith.constant 0 : i32
    %c0_i32_0 = arith.constant 0 : i32
    %c0_i32_1 = arith.constant 0 : i32
    return %c0_i32, %c0_i32_0 : i32, i32
  }
  func.func @transform_8(%arg0: i32) -> (i32, i32) {
    %c0_i32 = arith.constant 0 : i32
    %c0_i32_0 = arith.constant 0 : i32
    %c0_i32_1 = arith.constant 0 : i32
    return %c0_i32, %c0_i32_0 : i32, i32
  }
  func.func @transform_9(%arg0: i32) -> (i32, i32) {
    %c0_i32 = arith.constant 0 : i32
    %c0_i32_0 = arith.constant 0 : i32
    %c0_i32_1 = arith.constant 0 : i32
    return %c0_i32, %c0_i32_0 : i32, i32
  }
  func.func @transform_10(%arg0: i32) -> (i32, i32) {
    %c0_i32 = arith.constant 0 : i32
    %c0_i32_0 = arith.constant 0 : i32
    %c0_i32_1 = arith.constant 0 : i32
    return %c0_i32, %c0_i32_0 : i32, i32
  }
  func.func @transform_11(%arg0: i32) -> (i32, i32) {
    %c0_i32 = arith.constant 0 : i32
    %c0_i32_0 = arith.constant 0 : i32
    %c0_i32_1 = arith.constant 0 : i32
    return %c0_i32, %c0_i32_0 : i32, i32
  }
  func.func @transform_12(%arg0: i32) -> (i32, i32) {
    %c0_i32 = arith.constant 0 : i32
    %c0_i32_0 = arith.constant 0 : i32
    %c0_i32_1 = arith.constant 0 : i32
    return %c0_i32, %c0_i32_0 : i32, i32
  }
  func.func @transform_13(%arg0: i32) -> (i32, i32, i32, i32) {
    %c0_i32 = arith.constant 0 : i32
    %c0_i32_0 = arith.constant 0 : i32
    %c0_i32_1 = arith.constant 0 : i32
    %c0_i32_2 = arith.constant 0 : i32
    return %arg0, %c0_i32, %c0_i32_0, %c0_i32_1 : i32, i32, i32, i32
  }
}

</mosaic_0001>

<bundles_post_ra>
// kernel: tpu_custom_call.1
= control target key start
LH: loop header
LB: loop body
LE: loop exit
PB: predicated region body
PF: predicated region fallthrough
CT: control target
= control target key end

     0   :  { %s3937_s0 = inlined_call_operand.hbm [shape: f32[2,16,16,128], index: 0, kind: input, shape index: {}]   ;;  %s3938_s1 = inlined_call_operand.vmem [shape: f32[1,128], index: 1, kind: input, shape index: {}]   ;;  %s3939_s2 = inlined_call_operand.vmem [shape: f32[3,8,16], index: 2, kind: input, shape index: {}]   ;;  %s3940_s3 = inlined_call_operand.vmem [shape: f32[3,16,8], index: 3, kind: input, shape index: {}]   ;;  %s3941_s4 = inlined_call_operand.vmem [shape: f32[3,16,8], index: 4, kind: input, shape index: {}]   ;;  %s3942_s5 = inlined_call_operand.vmem [shape: f32[3,8,16], index: 5, kind: input, shape index: {}]   ;;  %s3943_s6 = inlined_call_operand.vmem [shape: f32[2], index: 6, kind: input, shape index: {}]   ;;  %s3944_s7 = inlined_call_operand.vmem [shape: f32[2,128], index: 7, kind: input, shape index: {}]   ;;  %s3945_s8 = inlined_call_operand.vmem [shape: f32[1,2], index: 8, kind: input, shape index: {}]   ;;  %s3946_s9 = inlined_call_operand.vmem [shape: f32[2,128], index: 9, kind: input, shape index: {}]   ;;  %s3947_s10 = inlined_call_operand.vmem [shape: f32[1,128], index: 10, kind: input, shape index: {}]   ;;  %s3948_s11 = inlined_call_operand.vmem [shape: bf16[128,128], index: 11, kind: input, shape index: {}]   ;;  %s3949_s12 = inlined_call_operand.vmem [shape: f32[1,128], index: 12, kind: input, shape index: {}]   ;;  %s3950_s13 = inlined_call_operand.hbm [shape: f32[2,16,16,128], index: 13, kind: output, shape index: {}]  }
   0x1   :  { %3960 = sst [smem:[#allocation16_spill]] %s3943_s6 }
   0x2   :  { %3961 = sst [smem:[#allocation17_spill]] %s3950_s13 }
   0x3   :  { %18 = vsyncpa [#allocation3], 0 }
   0x4   :  { %20 = vsyncpa [#allocation3 + $0x1], 0 }
   0x5   :  { %21 = vsyncpa [#allocation5], 0 }
   0x6   :  { %22 = vsyncpa [#allocation4], 0 }
   0x7   :  { %24 = vsyncpa [#allocation4 + $0x1], 0  ;;  %s3260_s25 = smov 0   ;;  %s3262_s26 = smov 0  }
   0x8   :  { %s3264_s27 = smov 0   ;;  %s3266_s28 = smov 0  }
   0x9 LB: > { %3962 = sst [smem:[#allocation11_spill]] %s3165_s25  ;;  %s3281_s29 = sadd.s32 4294967295, %s3177_s28   ;;  %s3177_s28 = sphi %s3266_s28, %s3984_s28   ;;  %s3173_s27 = sphi %s3264_s27, %s3986_s27   ;;  %s3169_s26 = sphi %s3262_s26, %s3988_s26   ;;  %s3165_s25 = sphi %s3260_s25, %s3987_s25  }
   0xa   : > { %3963 = sst [smem:[#allocation12_spill]] %s3173_s27  ;;  %s2594_s30 = sadd.s32 4294967294, %s3177_s28  }
   0xb   : > { %s3285_s14 = sadd.s32 1, %s3177_s28   ;;  %s37_s15 = sadd.s32 1, %s3173_s27 }
   0xc   : > { %3964 = sst [smem:[#allocation13_spill]] %s3285_s14  ;;  %s34_s16 = ssub.s32 %s3177_s28, %s3285_s14 }
   0xd   : > { %p44_p0 = scmp.ne.s32.totalorder %s3173_s27, %s3169_s26  ;;  %p35_p1 = scmp.eq.s32.totalorder %s34_s16, 0 }
   0xe   : > { %p45_p2 = scmp.eq.s32.totalorder %s3177_s28, 0  ;;  %p50_p3 = scmp.ne.s32.totalorder %s3169_s26, %s3165_s25 }
   0xf   : > { %p3952_p4 = scmp.eq.s32.totalorder %s3281_s29, 0  ;;  %p326_p7 = scmp.eq.s32.totalorder %s3281_s29, 1 }
  0x10   : > { %s3297_s17 = scalar_select %p35_p1, %s3173_s27, %s37_s15  }
  0x11   : > { %p3299_p5 = por %p45_p2, %p44_p0  ;;  %p3305_p6 = por %p3952_p4, %p50_p3 }
  0x12   : > { %3965 = sst [smem:[#allocation14_spill]] %s3297_s17  ;;  %p332_p8 = scmp.eq.s32.totalorder %s2594_s30, 1 }
  0x13   : > { %s3967_s19 = scalar_select %p3305_p6, 1, 0 }
  0x14   : > { %p2595_p9 = scmp.ge.s32.totalorder %s3177_s28, 1  ;;  %p339_p10 = scmp.lt.s32.totalorder %s3177_s28, 3 }
  0x15   : > { %p3312_p11 = por %p326_p7, %p44_p0  ;;  %p3316_p12 = por %p332_p8, %p50_p3 }
  0x16   : > { %p3320_p13 = pnand %p2595_p9, %p339_p10  ;;  %s3972_s6 = sld [smem:[#allocation16_spill]] }
  0x17   : > { %s3968_s20 = scalar_select %p3312_p11, 1, 0 }
  0x18   : > { %s3969_s21 = scalar_select %p3316_p12, 1, 0 }
  0x19   : > { %p2868_p1 = pneg %p3320_p13  ;;  %p2881_p2 = scmp.lt.s32.totalorder %s3177_s28, 2 }
  0x1a   : > { %3970 = sst [smem:[#allocation15_spill]] %s3969_s21  ;;  %s396_s16 = sand.u32 1, %s3173_s27  }
  0x1b   : > { %p3333_p7 = pnand %p2868_p1, %p3952_p4  ;;  %p3340_p3 = pnand %p2881_p2, %p3299_p5 }
  0x1c   : > { %s367_s15 = sshll.u32 %s3972_s6, 4  ;;  %s2598_s23 = sshll.u32 %s396_s16, 8  ;;  %s368_s15 = int_to_ptr.vmem [resolvable:$true] %s367_s15 }
  0x1d   : > { %s3062_s24 = scalar_lea.vmem %s368_s15, 16  ;;  %p3064_p9 = pneg %p3333_p7 }
  0x1e   : > { %p3063_p8 = scmp.ne.s32.totalorder %s368_s15, %s3062_s24  ;;  %p3070_p12 = scmp.lt.s32.totalorder %s368_s15, %s368_s15 }
  0x1f   : > { %p3071_p11 = scmp.lt.s32.totalorder %s3062_s24, %s3062_s24 }
  0x20   : > { %p3065_p10 = pnand %p3064_p9, %p3063_p8 }
  0x21   : > { %p3072_p1 = por %p3071_p11, %p3070_p12 }
  0x22   : > { %p3066_p0 = pneg %p3065_p10 }
  0x24   : > { %p3073_p4 = pnand %p3072_p1, %p3066_p0 }
  0x26   : > { %3076 = shalt.err (!%p3073_p4)
}
  0x27   : > { %s3179_s6 = smov [#allocation6]   ;;  %s2640_s18 = sshll.u32 %s3177_s28, 12 }
  0x28   : > { %2871 = dma.vmem_to_smem (!%p3333_p7), %s368_s15, 16, %s3179_s6, [#allocation5]  }
  0x29   : > { %s400_s27 = scalar_lea.vmem [#allocation2], %s2598_s23  ;;  %s3352_s13 = scalar_lea.hbm %s3937_s0, %s2640_s18 }
  0x2a   : > { %s407_s14 = sshll.u32 %s400_s27, 4  ;;  %s3356_s24 = scalar_lea.sflag [#allocation3], %s396_s16  ;;  %s3354_s14 = int_to_ptr.vmem [resolvable:$true] %s407_s14 }
  0x2b   : > { %s3077_s30 = scalar_lea.hbm %s3352_s13, 4096  ;;  %p3079_p5 = pneg %p3340_p3 }
  0x2c   : > { %p3078_p4 = scmp.ne.s32.totalorder %s3352_s13, %s3077_s30  ;;  %s3082_s27 = scalar_lea.hbm %s3937_s0, 8192 }
  0x2d   : > { %p3083_p0 = scmp.lt.u32.totalorder %s3352_s13, %s3937_s0  ;;  %p3084_p2 = scmp.lt.u32.totalorder %s3082_s27, %s3077_s30 }
  0x2e   : > { %p3080_p11 = pnand %p3079_p5, %p3078_p4  ;;  %p3086_p8 = scmp.lt.u32.totalorder %s3077_s30, %s3352_s13 }
  0x2f   : > { %p3085_p7 = por %p3084_p2, %p3083_p0 }
  0x30   : > { %p3081_p12 = pneg %p3080_p11 }
  0x31   : > { %p3087_p9 = por %p3086_p8, %p3085_p7 }
  0x33   : > { %p3088_p10 = pnand %p3087_p9, %p3081_p12 }
  0x35   : > { %3091 = shalt.err (!%p3088_p10)
}
  0x36   : > { %s3092_s16 = scalar_lea.vmem %s3354_s14, 4096  ;;  %s3180_s23 = smov [#allocation2]  }
  0x37   : > { %p3093_p1 = scmp.ne.s32.totalorder %s3354_s14, %s3092_s16  ;;  %s3097_s18 = sshll.u32 %s3180_s23, 4  ;;  %s3098_s18 = int_to_ptr.vmem [resolvable:$false] %s3097_s18 }
  0x38   : > { %s3099_s6 = scalar_lea.vmem %s3098_s18, 8192  ;;  %p3100_p6 = scmp.lt.s32.totalorder %s3354_s14, %s3098_s18 }
  0x39   : > { %p3095_p4 = pnand %p3093_p1, %p3079_p5  ;;  %p3101_p0 = scmp.lt.s32.totalorder %s3099_s6, %s3092_s16 }
  0x3b   : > { %p3096_p11 = pneg %p3095_p4  ;;  %p3102_p2 = por %p3101_p0, %p3100_p6 }
  0x3d   : > { %p3103_p7 = pnand %p3102_p2, %p3096_p11 }
  0x3f   : > { %3106 = shalt.err (!%p3103_p7)
}
  0x40   : > { %s3181_s30 = smov 128   ;;  %s3182_s25 = smov 8  }
  0x41   : > { %2875 = dma.hbm_to_vmem [thread:$0]  (!%p3340_p3), %s3352_s13, 4096, %s3354_s14, %s3356_s24, %s3181_s30, %s3181_s30, %s3182_s25  }
  0x42   : > { %419 = sbr.rel (%p3320_p13) target bundleno = 1876 (0x754), region = 72  ;;  %s3387_s27 = sand.u32 (!%p3320_p13), 1, %s3169_s26  }
  0x43   : > { %s2602_s21 = sshll.u32 (!%p3320_p13), %s3387_s27, 8  ;;  %s422_s15 = scalar_lea.sflag (!%p3320_p13), [#allocation3], %s3387_s27 }
  0x44   : > { %s3393_s16 = scalar_lea.vmem (!%p3320_p13), [#allocation2], %s2602_s21  ;;  %p3975_p6 = scmp.ne.s32.totalorder (!%p3320_p13), %s3967_s19, 0 }
  0x49   : > { %3152 = dma.done.wait (%p3975_p6), %s422_s15, 4096  }
  0x4a   : > { %3154 = vsyncadd (%p3975_p6), %s422_s15, 4294963200  ;;  %p3976_p3 = scmp.eq.s32.totalorder %s3281_s29, 0 }
  0x4c   : > { %3156 = dma.done.wait (%p3976_p3), [#allocation5], 16   ;;  %p3977_p13 = pmov %p3976_p3 }
  0x4e   : > { %3158 = vsyncadd (%p3977_p13), [#allocation5], 4294967280 }
  0x4f   : > { %434 = sfence }
  0x50   : > { %v476_v0 = vld [vmem:[%s3393_s16 + $0x10] sm:$0xff]  ;;  %v3407_v1 = vld [vmem:[%s3938_s1] ss:$0 sm:$0xff]  ;;  %v475_v4 = vld [vmem:[%s3393_s16 + $0x8] sm:$0xff]  ;;  %vm3184_vm0 = vmmov 0   ;;  %vm672_vm1 = vcmask 130112  }
  0x51   : > { %v474_v2 = vld [vmem:[%s3393_s16] sm:$0xff]  ;;  %v515_v3 = vmul.f32 %v3407_v1, %v476_v0  ;;  %v477_v6 = vld [vmem:[%s3393_s16 + $0x18] sm:$0xff]  ;;  %v514_v9 = vmul.f32 %v3407_v1, %v475_v4  ;;  %v3417_v11 = vld [vmem:[%s3393_s16 + $0x88] sm:$0xff]  ;;  %vm809_vm2 = vcmask 1041409   ;;  %vm811_vm3 = vcmask 1042434   ;;  %s627_s15 = sld [smem:[#allocation6]] }
  0x52   : > { %v513_v5 = vmul.f32 %v3407_v1, %v474_v2  ;;  %v1769_v7 = vadd.f32 %v475_v4, %v474_v2  ;;  %v516_v8 = vmul.f32 %v3407_v1, %v477_v6  ;;  %v490_v12 = vld [vmem:[%s3393_s16 + $0x80] sm:$0xff]  ;;  %v530_v14 = vmul.f32 %v3407_v1, %v3417_v11  ;;  %v493_v17 = vld [vmem:[%s3393_s16 + $0x98] sm:$0xff]  ;;  %v492_v18 = vld [vmem:[%s3393_s16 + $0x90] sm:$0xff]  ;;  %s2606_s22 = sld [smem:[#allocation6 + $0x1]]  ;;  %s3819_s14 = scalar_lea.vmem [#allocation7], %s2602_s21 }
  0x53   : > { %549 = vadd.xlane.f32.xlu1 %v515_v3  ;;  %v529_v15 = vmul.f32 %v3407_v1, %v490_v12  ;;  %v478_v16 = vld [vmem:[%s3393_s16 + $0x20] sm:$0xff]  ;;  %v479_v20 = vld [vmem:[%s3393_s16 + $0x28] sm:$0xff]  ;;  %v480_v21 = vld [vmem:[%s3393_s16 + $0x30] sm:$0xff]  ;;  %v532_v23 = vmul.f32 %v3407_v1, %v493_v17  ;;  %v531_v24 = vmul.f32 %v3407_v1, %v492_v18  ;;  %vm813_vm4 = vcmask 1043459   ;;  %s2641_s21 = sshll.u32 %s3281_s29, 12  ;;  %s2509_s17 = sshll.u32 %s3819_s14, 4  ;;  %s3891_s17 = int_to_ptr.vmem [resolvable:$true] %s2509_s17 }
  0x54   : > { %545 = vadd.xlane.f32.xlu0 %v513_v5  ;;  %v1770_v10 = vadd.f32 %v1769_v7, %v476_v0  ;;  %v481_v25 = vld [vmem:[%s3393_s16 + $0x38] sm:$0xff]  ;;  %v482_v27 = vld [vmem:[%s3393_s16 + $0x40] sm:$0xff]  ;;  %v518_v29 = vmul.f32 %v3407_v1, %v479_v20  ;;  %v517_v30 = vmul.f32 %v3407_v1, %v478_v16  ;;  %v495_v31 = vld [vmem:[%s3393_s16 + $0xa8] sm:$0xff]  ;;  %v519_v43 = vmul.f32 %v3407_v1, %v480_v21  ;;  %s3978_s24 = sld [smem:[#allocation17_spill]]  ;;  %s2496_s18 = scalar_lea.sflag [#allocation4], %s3387_s27 }
  0x55   : > { %v494_v32 = vld [vmem:[%s3393_s16 + $0xa0] sm:$0xff]  ;;  %v483_v34 = vld [vmem:[%s3393_s16 + $0x48] sm:$0xff]  ;;  %v534_v36 = vmul.f32 %v3407_v1, %v495_v31  ;;  %v484_v38 = vld [vmem:[%s3393_s16 + $0x50] sm:$0xff]  ;;  %v520_v42 = vmul.f32 %v3407_v1, %v481_v25  ;;  %v521_v57 = vmul.f32 %v3407_v1, %v482_v27  ;;  %vm815_vm5 = vcmask 1044484   ;;  %s3107_s6 = scalar_lea.vmem %s3891_s17, 4096  ;;  %p3979_p12 = scmp.ne.s32.totalorder %s3968_s20, 0 }
  0x56   : > { %v1771_v13 = vadd.f32 %v1770_v10, %v477_v6  ;;  %v533_v37 = vmul.f32 %v3407_v1, %v494_v32  ;;  %v485_v40 = vld [vmem:[%s3393_s16 + $0x58] sm:$0xff]  ;;  %v486_v44 = vld [vmem:[%s3393_s16 + $0x60] sm:$0xff]  ;;  %v496_v46 = vld [vmem:[%s3393_s16 + $0xb0] sm:$0xff]  ;;  %v522_v56 = vmul.f32 %v3407_v1, %v483_v34  ;;  %v523_v4 = vmul.f32 %v3407_v1, %v484_v38  ;;  %p3108_p5 = scmp.ne.s32.totalorder %s3891_s17, %s3107_s6  ;;  %s3187_s29 = smov [#allocation7]  }
  0x57   : > { %551 = vadd.xlane.f32.xlu1 %v516_v8  ;;  %v497_v45 = vld [vmem:[%s3393_s16 + $0xb8] sm:$0xff]  ;;  %v487_v48 = vld [vmem:[%s3393_s16 + $0x68] sm:$0xff]  ;;  %v535_v51 = vmul.f32 %v3407_v1, %v496_v46  ;;  %v488_v52 = vld [vmem:[%s3393_s16 + $0x70] sm:$0xff]  ;;  %v524_v3 = vmul.f32 %v3407_v1, %v485_v40  ;;  %vm817_vm6 = vcmask 1045509   ;;  %vm819_vm7 = vcmask 1046534   ;;  %s3111_s30 = sshll.u32 %s3187_s29, 4  ;;  %s3112_s30 = int_to_ptr.vmem [resolvable:$false] %s3111_s30 }
  0x58   : > { %547 = vadd.xlane.f32.xlu0 %v514_v9  ;;  %v1772_v19 = vadd.f32 %v1771_v13, %v478_v16  ;;  %v536_v50 = vmul.f32 %v3407_v1, %v497_v45  ;;  %v489_v54 = vld [vmem:[%s3393_s16 + $0x78] sm:$0xff]  ;;  %v499_v58 = vld [vmem:[%s3393_s16 + $0xc8] sm:$0xff]  ;;  %v498_v59 = vld [vmem:[%s3393_s16 + $0xc0] sm:$0xff]  ;;  %v526_v13 = vmul.f32 %v3407_v1, %v487_v48  ;;  %vm821_vm8 = vcmask 1047559   ;;  %p3109_p8 = pnand %p3108_p5, %p3979_p12  ;;  %s3113_s25 = scalar_lea.vmem %s3112_s30, 8192 }
  0x59   : > { %v538_v62 = vmul.f32 %v3407_v1, %v499_v58  ;;  %v537_v63 = vmul.f32 %v3407_v1, %v498_v59  ;;  %v501_v5 = vld [vmem:[%s3393_s16 + $0xd8] sm:$0xff]  ;;  %v500_v6 = vld [vmem:[%s3393_s16 + $0xd0] sm:$0xff]  ;;  %v502_v16 = vld [vmem:[%s3393_s16 + $0xe0] sm:$0xff]  ;;  %vm832_vm9 = vcmask 130048   ;;  %vm1275_vm10 = vcmask 64512   ;;  %p3114_p10 = scmp.lt.s32.totalorder %s3891_s17, %s3112_s30  ;;  %p3115_p1 = scmp.lt.s32.totalorder %s3113_s25, %s3107_s6 }
  0x5a   : > { %v1773_v22 = vadd.f32 %v1772_v19, %v479_v20  ;;  %v540_v9 = vmul.f32 %v3407_v1, %v501_v5  ;;  %v539_v10 = vmul.f32 %v3407_v1, %v500_v6  ;;  %v541_v20 = vmul.f32 %v3407_v1, %v502_v16  ;;  %s3889_s23 = scalar_lea.hbm %s3978_s24, %s2641_s21  ;;  %p3110_p9 = pneg %p3109_p8 }
  0x5b   : > { %579 = vadd.xlane.f32.xlu1 %v530_v14  ;;  %v525_v14 = vmul.f32 %v3407_v1, %v486_v44  ;;  %vm1810_vm11 = vcmask 1041408   ;;  %p3116_p4 = por %p3115_p1, %p3114_p10 }
  0x5c   : > { %577 = vadd.xlane.f32.xlu0 %v529_v15  ;;  %v1774_v26 = vadd.f32 %v1773_v22, %v480_v21  ;;  %v503_v15 = vld [vmem:[%s3393_s16 + $0xe8] sm:$0xff] }
  0x5d   : > { %v542_v19 = vmul.f32 %v3407_v1, %v503_v15  ;;  %p3117_p11 = pnand %p3116_p4, %p3110_p9 }
  0x5e   : > { %v1775_v28 = vadd.f32 %v1774_v26, %v481_v25  ;;  %v505_v25 = vld [vmem:[%s3393_s16 + $0xf8] sm:$0xff]  ;;  %v504_v26 = vld [vmem:[%s3393_s16 + $0xf0] sm:$0xff] }
  0x5f   : > { %583 = vadd.xlane.f32.xlu1 %v532_v23  ;;  %v528_v23 = vmul.f32 %v3407_v1, %v489_v54 }
  0x60   : > { %581 = vadd.xlane.f32.xlu0 %v531_v24  ;;  %v1776_v33 = vadd.f32 %v1775_v28, %v482_v27  ;;  %v527_v24 = vmul.f32 %v3407_v1, %v488_v52 }
  0x62   : > { %v1777_v35 = vadd.f32 %v1776_v33, %v483_v34  ;;  %v3183_v33 = vmov 0.0|0.0   ;;  %v3185_v34 = vmov 0.0  }
  0x63   : > { %555 = vadd.xlane.f32.xlu1 %v518_v29  ;;  %v544_v29 = vmul.f32 %v3407_v1, %v505_v25  ;;  %2822 = vmatprep.subr.bf16.mxu0 %v3183_v33 }
  0x64   : > { %553 = vadd.xlane.f32.xlu0 %v517_v30  ;;  %v1778_v39 = vadd.f32 %v1777_v35, %v484_v38  ;;  %v543_v30 = vmul.f32 %v3407_v1, %v504_v26  ;;  %2831 = vmatprep.subr.bf16.mxu1 %v3183_v33  ;;  %v612_v1 = vld [vmem:[%s3940_s3] sm:$0xff]  ;;  %v613_v35 = vld [vmem:[%s3940_s3 + $0x8] sm:$0xff] }
  0x65   : > { %2706 = vmatprep.mubr.msk.f32.mxu0 %vm3184_vm0, %v3185_v34  ;;  %2727 = vmatprep.mubr.msk.f32.mxu1 %vm3184_vm0, %v3185_v34 }
  0x66   : > { %v1779_v41 = vadd.f32 %v1778_v39, %v485_v40 }
  0x67   : > { %587 = vadd.xlane.f32.xlu1 %v534_v36  ;;  %v2832_v36 = vpack.c.bf16 %v613_v35, %v612_v1 }
  0x68   : > { %585 = vadd.xlane.f32.xlu0 %v533_v37  ;;  %v1780_v47 = vadd.f32 %v1779_v41, %v486_v44 }
  0x69   : > { %2833 = vmatpush3.bf16.msra.mxu1 %v2832_v36 }
  0x6a   : > { %v1781_v49 = vadd.f32 %v1780_v47, %v487_v48  ;;  %2837 = vmatprep.subr.bf16.mxu1 %v3183_v33 }
  0x6b   : > { %559 = vadd.xlane.f32.xlu1 %v520_v42 }
  0x6c   : > { %557 = vadd.xlane.f32.xlu0 %v519_v43  ;;  %v1782_v53 = vadd.f32 %v1781_v49, %v488_v52 }
  0x6e   : > { %v1783_v55 = vadd.f32 %v1782_v53, %v489_v54  ;;  %v661_v53 = vlaneseq }
  0x6f   : > { %591 = vadd.xlane.f32.xlu1 %v536_v50 }
  0x70   : > { %589 = vadd.xlane.f32.xlu0 %v535_v51  ;;  %v1784_v60 = vadd.f32 %v1783_v55, %v490_v12 }
  0x72   : > { %v1785_v61 = vadd.f32 %v1784_v60, %v3417_v11  ;;  %v3503_v60 = vshrl.u32 %v661_v53, 7 }
  0x73   : > { %563 = vadd.xlane.f32.xlu1 %v522_v56  ;;  %v662_v56 = vand.u32 127, %v661_v53 }
  0x74   : > { %561 = vadd.xlane.f32.xlu0 %v521_v57  ;;  %v1786_v0 = vadd.f32 %v1785_v61, %v492_v18 }
  0x76   : > { %v1787_v2 = vadd.f32 %v1786_v0, %v493_v17  ;;  %v3513_v0 = vsub.s32 %v662_v56, %v3503_v60 }
  0x77   : > { %595 = vadd.xlane.f32.xlu1 %v538_v62 }
  0x78   : > { %593 = vadd.xlane.f32.xlu0 %v537_v63  ;;  %v1788_v7 = vadd.f32 %v1787_v2, %v494_v32 }
  0x7a   : > { %v1789_v8 = vadd.f32 %v1788_v7, %v495_v31 }
  0x7b   : > { %567 = vadd.xlane.f32.xlu1 %v524_v3 }
  0x7c   : > { %565 = vadd.xlane.f32.xlu0 %v523_v4  ;;  %v1790_v11 = vadd.f32 %v1789_v8, %v496_v46 }
  0x7e   : > { %v1791_v12 = vadd.f32 %v1790_v11, %v497_v45 }
  0x7f   : > { %599 = vadd.xlane.f32.xlu1 %v540_v9 }
  0x80   : > { %597 = vadd.xlane.f32.xlu0 %v539_v10  ;;  %v1792_v17 = vadd.f32 %v1791_v12, %v498_v59  ;;  %v667_v59 = vadd.s32 4294967288, %v662_v56 }
  0x82   : > { %v1793_v18 = vadd.f32 %v1792_v17, %v499_v58  ;;  %v3510_v63 = vsub.s32 %v667_v59, %v3503_v60 }
  0x83   : > { %571 = vadd.xlane.f32.xlu1 %v526_v13 }
  0x84   : > { %569 = vadd.xlane.f32.xlu0 %v525_v14  ;;  %v1794_v21 = vadd.f32 %v1793_v18, %v500_v6 }
  0x86   : > { %v1795_v22 = vadd.f32 %v1794_v21, %v501_v5 }
  0x87   : > { %603 = vadd.xlane.f32.xlu1 %v542_v19 }
  0x88   : > { %601 = vadd.xlane.f32.xlu0 %v541_v20  ;;  %v1796_v27 = vadd.f32 %v1795_v22, %v502_v16 }
  0x8a   : > { %v1797_v28 = vadd.f32 %v1796_v27, %v503_v15 }
  0x8b   : > { %575 = vadd.xlane.f32.xlu1 %v528_v23 }
  0x8c   : > { %573 = vadd.xlane.f32.xlu0 %v527_v24  ;;  %v1798_v31 = vadd.f32 %v1797_v28, %v504_v26 }
  0x8e   : > { %v3476_v32 = vadd.f32 %v1798_v31, %v505_v25 }
  0x8f   : > { %607 = vadd.xlane.f32.xlu1 %v544_v29 }
  0x90   : > { %605 = vadd.xlane.f32.xlu0 %v543_v30 }
  0xe0   : > { %v550_v37 = vpop.xlane.xlu1 %549 }
  0xe1   : > { %v546_v38 = vpop.xlane.xlu0 %545  ;;  %v677_v6 = vrot.slane %v550_v37, %v3513_v0 }
  0xe2   : > { %v666_v7 = vrot.slane %v546_v38, %v3513_v0 }
  0xe4   : > { %v552_v39 = vpop.xlane.xlu1 %551 }
  0xe5   : > { %v548_v40 = vpop.xlane.xlu0 %547  ;;  %v681_v4 = vrot.slane %v552_v39, %v3510_v63 }
  0xe6   : > { %v671_v5 = vrot.slane %v548_v40, %v3510_v63 }
  0xe7   : > { %v682_v16 = vsel %vm672_vm1, %v681_v4, %v677_v6 }
  0xe8   : > { %v580_v41 = vpop.xlane.xlu1 %579  ;;  %v673_v17 = vsel %vm672_vm1, %v671_v5, %v666_v7 }
  0xe9   : > { %v578_v42 = vpop.xlane.xlu0 %577  ;;  %v744_v8 = vrot.slane %v580_v41, %v3510_v63  ;;  %v810_v22 = vsel %vm809_vm2, %v682_v16, %v673_v17  ;;  %v614_v17 = vld [vmem:[%s3940_s3 + $0x10] sm:$0xff] }
  0xea   : > { %v740_v9 = vrot.slane %v578_v42, %v3513_v0 }
  0xec   : > { %v584_v43 = vpop.xlane.xlu1 %583  ;;  %v745_v23 = vsel %vm672_vm1, %v744_v8, %v740_v9 }
  0xed   : > { %v582_v44 = vpop.xlane.xlu0 %581  ;;  %v753_v10 = vrot.slane %v584_v43, %v3510_v63 }
  0xee   : > { %v749_v11 = vrot.slane %v582_v44, %v3513_v0 }
  0xf0   : > { %v556_v45 = vpop.xlane.xlu1 %555  ;;  %v754_v24 = vsel %vm672_vm1, %v753_v10, %v749_v11 }
  0xf1   : > { %v554_v46 = vpop.xlane.xlu0 %553  ;;  %v690_v12 = vrot.slane %v556_v45, %v3510_v63 }
  0xf2   : > { %v686_v13 = vrot.slane %v554_v46, %v3513_v0 }
  0xf4   : > { %v588_v47 = vpop.xlane.xlu1 %587  ;;  %v691_v25 = vsel %vm672_vm1, %v690_v12, %v686_v13 }
  0xf5   : > { %v586_v48 = vpop.xlane.xlu0 %585  ;;  %v762_v18 = vrot.slane %v588_v47, %v3510_v63  ;;  %v812_v53 = vsel %vm811_vm3, %v691_v25, %v810_v22  ;;  %v617_v25 = vld [vmem:[%s3940_s3 + $0x28] sm:$0xff] }
  0xf6   : > { %v758_v19 = vrot.slane %v586_v48, %v3513_v0 }
  0xf8   : > { %v560_v49 = vpop.xlane.xlu1 %559  ;;  %v763_v1 = vsel %vm672_vm1, %v762_v18, %v758_v19  ;;  %v615_v18 = vld [vmem:[%s3940_s3 + $0x18] sm:$0xff] }
  0xf9   : > { %v558_v50 = vpop.xlane.xlu0 %557  ;;  %v699_v20 = vrot.slane %v560_v49, %v3510_v63  ;;  %v2829_v19 = vpack.c.bf16 %v615_v18, %v614_v17  ;;  %v1878_v18 = vsub.s32 3, %v3503_v60 }
  0xfa   : > { %v695_v21 = vrot.slane %v558_v50, %v3513_v0 }
  0xfc   : > { %v3491_v51 = vpop.xlane.xlu1 %591  ;;  %v700_v35 = vsel %vm672_vm1, %v699_v20, %v695_v21 }
  0xfd   : > { %v3493_v52 = vpop.xlane.xlu0 %589  ;;  %v771_v28 = vrot.slane %v3491_v51, %v3510_v63  ;;  %v814_v56 = vsel %vm813_vm4, %v700_v35, %v812_v53  ;;  %v620_v35 = vld [vmem:[%s3941_s4 + $0x10] sm:$0xff] }
  0xfe   : > { %v767_v29 = vrot.slane %v3493_v52, %v3513_v0  ;;  %v823_v52 = vsel %vm809_vm2, %v754_v24, %v745_v23  ;;  %v611_v24 = vld [vmem:[%s3939_s2 + $0x10] sm:$0xff] }
 0x100   : > { %v3495_v54 = vpop.xlane.xlu1 %563  ;;  %v772_v48 = vsel %vm672_vm1, %v771_v28, %v767_v29 }
 0x101   : > { %v3497_v55 = vpop.xlane.xlu0 %561  ;;  %v708_v30 = vrot.slane %v3495_v54, %v3510_v63 }
 0x102   : > { %v704_v31 = vrot.slane %v3497_v55, %v3513_v0  ;;  %v824_v55 = vsel %vm811_vm3, %v763_v1, %v823_v52  ;;  %v2625_v52 = vld [vmem:[%s3945_s8] ss:$0 sm:$0xff] }
 0x103   : > { %v825_v59 = vsel %vm813_vm4, %v772_v48, %v824_v55  ;;  %v624_v48 = vld [vmem:[%s3942_s5] sm:$0xff]  ;;  %1821 = vbcast.lane.b32.xlu1 %v2625_v52, 256 }
 0x104   : > { %v3499_v57 = vpop.xlane.xlu1 %595  ;;  %v709_v49 = vsel %vm672_vm1, %v708_v30, %v704_v31 }
 0x105   : > { %v3501_v58 = vpop.xlane.xlu0 %593  ;;  %v780_v36 = vrot.slane %v3499_v57, %v3510_v63 }
 0x106   : > { %v776_v37 = vrot.slane %v3501_v58, %v3513_v0 }
 0x108   : > { %v3505_v61 = vpop.xlane.xlu1 %567  ;;  %v781_v54 = vsel %vm672_vm1, %v780_v36, %v776_v37  ;;  %v618_v36 = vld [vmem:[%s3941_s4] sm:$0xff] }
 0x109   : > { %v3507_v62 = vpop.xlane.xlu0 %565  ;;  %v717_v38 = vrot.slane %v3505_v61, %v3510_v63  ;;  %v816_v61 = vsel %vm815_vm5, %v709_v49, %v814_v56  ;;  %v826_v5 = vsel %vm815_vm5, %v781_v54, %v825_v59  ;;  %v1800_v49 = vrot.slane %v3476_v32, 4  ;;  %v1808_v56 = vld [vmem:[%s3944_s7] sm:$0x3] }
 0x10a   : > { %v713_v39 = vrot.slane %v3507_v62, %v3513_v0 }
 0x10c   : > { %v3515_v2 = vpop.xlane.xlu1 %599  ;;  %v718_v57 = vsel %vm672_vm1, %v717_v38, %v713_v39  ;;  %v1272_v38 = vstv %s627_s15 }
 0x10d   : > { %v3517_v3 = vpop.xlane.xlu0 %597  ;;  %v789_v40 = vrot.slane %v3515_v2, %v3510_v63  ;;  %v818_v9 = vsel %vm817_vm6, %v718_v57, %v816_v61 }
 0x10e   : > { %v785_v41 = vrot.slane %v3517_v3, %v3513_v0 }
 0x110   : > { %v572_v14 = vpop.xlane.xlu1 %571  ;;  %v790_v58 = vsel %vm672_vm1, %v789_v40, %v785_v41 }
 0x111   : > { %v570_v15 = vpop.xlane.xlu0 %569  ;;  %v726_v42 = vrot.slane %v572_v14, %v3510_v63  ;;  %v827_v10 = vsel %vm817_vm6, %v790_v58, %v826_v5 }
 0x112   : > { %v722_v43 = vrot.slane %v570_v15, %v3513_v0 }
 0x114   : > { %v604_v26 = vpop.xlane.xlu1 %603  ;;  %v727_v62 = vsel %vm672_vm1, %v726_v42, %v722_v43  ;;  %v621_v43 = vld [vmem:[%s3941_s4 + $0x18] sm:$0xff] }
 0x115   : > { %v602_v27 = vpop.xlane.xlu0 %601  ;;  %v798_v44 = vrot.slane %v604_v26, %v3510_v63  ;;  %v820_v12 = vsel %vm819_vm7, %v727_v62, %v818_v9 }
 0x116   : > { %v794_v45 = vrot.slane %v602_v27, %v3513_v0 }
 0x118   : > { %v576_v46 = vpop.xlane.xlu1 %575  ;;  %v799_v2 = vsel %vm672_vm1, %v798_v44, %v794_v45  ;;  %v619_v44 = vld [vmem:[%s3941_s4 + $0x8] sm:$0xff]  ;;  %v622_v45 = vld [vmem:[%s3941_s4 + $0x20] sm:$0xff] }
 0x119   : > { %v574_v47 = vpop.xlane.xlu0 %573  ;;  %v735_v50 = vrot.slane %v576_v46, %v3510_v63  ;;  %v828_v13 = vsel %vm819_vm7, %v799_v2, %v827_v10  ;;  %v623_v46 = vld [vmem:[%s3941_s4 + $0x28] sm:$0xff] }
 0x11a   : > { %v731_v51 = vrot.slane %v574_v47, %v3513_v0  ;;  %v625_v47 = vld [vmem:[%s3942_s5 + $0x8] sm:$0xff] }
 0x11c   : > { %v608_v3 = vpop.xlane.xlu1 %607  ;;  %v736_v6 = vsel %vm672_vm1, %v735_v50, %v731_v51  ;;  %v1801_v50 = vadd.f32 %v1800_v49, %v3476_v32  ;;  %v3186_v32 = vmov 0  }
 0x11d   : > { %v606_v4 = vpop.xlane.xlu0 %605  ;;  %v807_v7 = vrot.slane %v608_v3, %v3510_v63  ;;  %v822_v14 = vsel %vm821_vm8, %v736_v6, %v820_v12  ;;  %v609_v63 = vld [vmem:[%s3939_s2] sm:$0xff]  ;;  %2925 = vset.pattern.permute.xlu0 %v3186_v32 }
 0x11e   : > { %v803_v8 = vrot.slane %v606_v4, %v3513_v0  ;;  %v610_v0 = vld [vmem:[%s3939_s2 + $0x8] sm:$0xff]  ;;  %v1802_v51 = vrot.slane %v1801_v50, 2  ;;  %v626_v4 = vld [vmem:[%s3942_s5 + $0x10] sm:$0xff] }
 0x120   : > { %v808_v11 = vsel %vm672_vm1, %v807_v7, %v803_v8  ;;  %v1803_v53 = vadd.f32 %v1802_v51, %v1801_v50 }
 0x121   : > { %v829_v15 = vsel %vm821_vm8, %v808_v11, %v828_v13  ;;  %v1764_v11 = vstv %s2606_s22 }
 0x122   : > { %v2823_v16 = vpack.c.bf16 %v829_v15, %v822_v14  ;;  %v1804_v54 = vrot.slane %v1803_v53, 1  ;;  %v3678_v15 = vsub.s32 0, %v3503_v60 }
 0x124   : > { %2824 = vmatpush3.bf16.msra.mxu0 %v2823_v16  ;;  %v1805_v55 = vadd.f32 %v1804_v54, %v1803_v53 }
 0x125   : > { %2825 = vmatprep.subr.bf16.mxu0 %v3183_v33 }
 0x126   : > { %v1807_v57 = vmul.f32 0.00390625, %v1805_v55 }
 0x127   : > { %2707 = vmatmul.mubr.msk.f32.vlgmr.msra.gmra.mrb[0].mxu0 %vm832_vm9, %v609_v63 }
 0x128   : > { %2827 = vmatpush3.bf16.msra.mxu0 %v2823_v16  ;;  %2713 = vmatprep.mubr.msk.f32.mxu0 %vm3184_vm0, %v3185_v34  ;;  %v1809_v58 = vmul.f32 %v1808_v56, %v1807_v57 }
 0x129   : > { %2828 = vmatprep.subr.bf16.mxu0 %v3183_v33 }
 0x12a   : > { %v1811_v59 = vsel %vm1810_vm11, %v1809_v58, 0.0 }
 0x12b   : > { %2714 = vmatmul.mubr.msk.f32.vlgmr.msra.gmra.mrb[2].mxu0 %vm832_vm9, %v610_v0  ;;  %1812 = vadd.xlane.f32.xlu0 %v1811_v59 }
 0x12c   : > { %2720 = vmatprep.mubr.msk.f32.mxu0 %vm3184_vm0, %v3185_v34  ;;  %2830 = vmatpush3.bf16.msra.mxu0 %v2829_v19 }
 0x12d   : > { %2834 = vmatprep.subr.bf16.mxu0 %v3183_v33  ;;  %v616_v33 = vld [vmem:[%s3940_s3 + $0x20] sm:$0xff] }
 0x12e   : > { %v2838_v26 = vpack.c.bf16 %v617_v25, %v616_v33  ;;  %v1900_v33 = vsub.s32 5, %v3503_v60  ;;  %v2927_v25 = vld [vmem:[%s3948_s11 + $0x8] sm:$0xff]  }
 0x175   : > { %v1822_v7 = vpop.permute.xlu1 %1821 }
 0x1b8   : > { %v1813_v8 = vpop.xlane.xlu0 %1812 }
 0x1b9   : > { %v1824_v9 = vadd.f32 %v1822_v7, %v1813_v8 }
 0x1bb   : > { %v1825_v10 = vmax.f32 %v1824_v9, 0.0 }
 0x1bd   : > { %1829 = vperm.xlu0 %2925, %v1825_v10  }
 0x1fa   : > { %v902_v20 = vpop.f32.mrb[0].mxu0 }
 0x1fb   : > { %v2708_v21 = vpop.f32.mrb[1].mxu0  ;;  %2728 = vmatmul.mubr.msk.f32.vlgmr.msra.gmra.mrb[0].mxu1 %vm832_vm9, %v902_v20  ;;  %v1856_v20 = vsub.s32 1, %v3503_v60 }
 0x1fc   : > { %2741 = vmatprep.mubr.msk.f32.mxu1 %vm3184_vm0, %v3185_v34  ;;  %2839 = vmatpush3.bf16.msra.mxu1 %v2838_v26  ;;  %v1889_v21 = vsub.s32 4, %v3503_v60 }
 0x1fe   : > { %v975_v22 = vpop.f32.mrb[2].mxu0 }
 0x1ff   : > { %v2715_v23 = vpop.f32.mrb[3].mxu0  ;;  %2721 = vmatmul.mubr.msk.f32.vlgmr.msra.gmra.mrb[4].mxu0 %vm832_vm9, %v975_v22  ;;  %v2926_v22 = vld [vmem:[%s3948_s11] sm:$0xff]  }
 0x200   : > { %2836 = vmatpush3.bf16.msra.mxu0 %v2823_v16  ;;  %2734 = vmatprep.mubr.msk.f32.mxu0 %vm3184_vm0, %v3185_v34  ;;  %v1867_v16 = vsub.s32 2, %v3503_v60 }
 0x203   : > { %2735 = vmatmul.mubr.msk.f32.vlgmr.msra.gmra.mrb[6].mxu0 %vm832_vm9, %v611_v24 }
 0x204   : > { %2746 = vmatprep.mubr.msk.f32.mxu0 %vm1275_vm10, %v618_v36 }
 0x2ce   : > { %v1121_v27 = vpop.f32.mrb[0].mxu1 }
 0x2cf   : > { %v2729_v28 = vpop.f32.mrb[1].mxu1 }
 0x2d0   : > { %v1911_v28 = vsub.s32 6, %v3503_v60 }
 0x2d2   : > { %v1048_v29 = vpop.f32.mrb[4].mxu0 }
 0x2d3   : > { %v1122_v34 = vadd.f32 %v1121_v27, %v1048_v29  ;;  %v2722_v30 = vpop.f32.mrb[5].mxu0  ;;  %v2928_v29 = vld [vmem:[%s3948_s11 + $0x10] sm:$0xff]  }
 0x2d6   : > { %v1194_v31 = vpop.f32.mrb[6].mxu0 }
 0x2d7   : > { %v2736_v1 = vpop.f32.mrb[7].mxu0  ;;  %2742 = vmatmul.mubr.msk.f32.vlgmr.msra.gmra.mrb[2].mxu1 %vm832_vm9, %v1194_v31  ;;  %v2929_v31 = vld [vmem:[%s3948_s11 + $0x18] sm:$0xff]  }
 0x2d8   : > { %2751 = vmatprep.mubr.msk.f32.mxu1 %vm1275_vm10, %v620_v35  ;;  %v2930_v35 = vld [vmem:[%s3948_s11 + $0x20] sm:$0xff]  }
 0x3aa   : > { %v1267_v37 = vpop.f32.mrb[2].mxu1 }
 0x3ab   : > { %v1271_v39 = vadd.f32 %v1267_v37, %v1122_v34  ;;  %v2743_v40 = vpop.f32.mrb[3].mxu1  ;;  %v2931_v37 = vld [vmem:[%s3948_s11 + $0x28] sm:$0xff]  }
 0x3ad   : > { %v1273_v41 = vadd.f32 %v1272_v38, %v1271_v39  ;;  %v2932_v39 = vld [vmem:[%s3948_s11 + $0x30] sm:$0xff]  }
 0x3af   : > { %v1274_v42 = vmax.f32 %v1273_v41, 0.0 }
 0x3b1   : > { %2744 = vmatprep.subr.mxu0 %v1274_v42  ;;  %2749 = vmatprep.subr.mxu1 %v1274_v42 }
 0x3b2   : > { %2745 = vmatpush3.msra.mxu0 %v1274_v42  ;;  %2750 = vmatpush3.msra.mxu1 %v1274_v42 }
 0x3b3   : > { %2752 = vmatmul.mubr.msk.f32.vlgmr.msra.gmra.mrb[4].mxu1 %vm1275_vm10, %v621_v43  ;;  %2764 = vmatprep.subr.mxu1 %v1274_v42 }
 0x3b4   : > { %2765 = vmatpush3.msra.mxu1 %v1274_v42  ;;  %2747 = vmatmul.mubr.msk.f32.vlgmr.msra.gmra.mrb[8].mxu0 %vm1275_vm10, %v619_v44  ;;  %v2933_v42 = vld [vmem:[%s3948_s11 + $0x38] sm:$0xff]   ;;  %v1922_v44 = vsub.s32 7, %v3503_v60  ;;  %v1830_v60 = vpop.permute.xlu0 %1829 }
 0x3b5   : > { %2766 = vmatprep.mubr.msk.f32.mxu1 %vm1275_vm10, %v622_v45  ;;  %2754 = vmatprep.subr.mxu0 %v625_v47 }
 0x3b6   : > { %2755 = vmatpush3.msra.mxu0 %v625_v47  ;;  %2840 = vmatprep.subr.bf16.mxu1 %v2926_v22 }
 0x3b7   : > { %2767 = vmatmul.mubr.msk.f32.vlgmr.msra.gmra.mrb[6].mxu1 %vm1275_vm10, %v623_v46  ;;  %2759 = vmatprep.subr.mxu0 %v624_v48 }
 0x3b8   : > { %2848 = vmatpush3.bf16.msra.mxu1 %v2926_v22 }
 0x3b9   : > { %2841 = vmatprep.subr.bf16.mxu1 %v2927_v25 }
 0x3bc   : > { %2849 = vmatpush3.bf16.msra.mxu1 %v2927_v25 }
 0x3bd   : > { %2842 = vmatprep.subr.bf16.mxu1 %v2928_v29 }
 0x3c0   : > { %2850 = vmatpush3.bf16.msra.mxu1 %v2928_v29 }
 0x3c1   : > { %2843 = vmatprep.subr.bf16.mxu1 %v2929_v31 }
 0x3c4   : > { %2851 = vmatpush3.bf16.msra.mxu1 %v2929_v31 }
 0x3c5   : > { %2844 = vmatprep.subr.bf16.mxu1 %v2930_v35 }
 0x3c8   : > { %2852 = vmatpush3.bf16.msra.mxu1 %v2930_v35 }
 0x3c9   : > { %2845 = vmatprep.subr.bf16.mxu1 %v2931_v37 }
 0x3cc   : > { %2853 = vmatpush3.bf16.msra.mxu1 %v2931_v37 }
 0x3cd   : > { %2846 = vmatprep.subr.bf16.mxu1 %v2932_v39 }
 0x3d0   : > { %2854 = vmatpush3.bf16.msra.mxu1 %v2932_v39 }
 0x3d1   : > { %2847 = vmatprep.subr.bf16.mxu1 %v2933_v42 }
 0x3d4   : > { %2855 = vmatpush3.bf16.msra.mxu1 %v2933_v42 }
 0x486   : > { %v2753_v61 = vpop.f32.mrb[4].mxu1 }
 0x487   : > { %v1429_v62 = vpop.f32.mrb[5].mxu1  ;;  %v2748_v2 = vpop.f32.mrb[8].mxu0 }
 0x488   : > { %2756 = vmatprep.mubr.msk.f32.mxu0 %vm1275_vm10, %v1429_v62  ;;  %v1348_v3 = vpop.f32.mrb[9].mxu0 }
 0x489   : > { %2757 = vmatmul.mubr.msk.f32.vlgmr.msra.gmra.mrb[10].mxu0 %vm1275_vm10, %v2753_v61 }
 0x48a   : > { %2760 = vmatpush3.msra.mxu0 %v624_v48  ;;  %2761 = vmatprep.mubr.msk.f32.mxu0 %vm1275_vm10, %v1348_v3  ;;  %v2768_v5 = vpop.f32.mrb[6].mxu1  ;;  %v1826_v48 = vld [vmem:[%s3946_s9] sm:$0x3] }
 0x48b   : > { %2769 = vmatprep.subr.mxu0 %v626_v4  ;;  %v1672_v6 = vpop.f32.mrb[7].mxu1  ;;  %v1832_v49 = vmul.f32 %v1830_v60, %v1826_v48 }
 0x48d   : > { %v1833_v50 = vsel %vm1810_vm11, %v1832_v49, 0.0 }
 0x48e   : > { %v1834_v52 = vrot.slane %v1833_v50, 4 }
 0x490   : > { %v1835_v54 = vadd.f32 %v1834_v52, %v1833_v50 }
 0x491   : > { %2762 = vmatmul.mubr.msk.f32.vlgmr.msra.gmra.mrb[10].mxu0 %vm1275_vm10, %v2748_v2 }
 0x492   : > { %2770 = vmatpush3.msra.mxu0 %v626_v4  ;;  %2771 = vmatprep.mubr.msk.f32.mxu0 %vm1275_vm10, %v1672_v6  ;;  %v1836_v57 = vrot.slane %v1835_v54, 2 }
 0x493   : > { %2774 = vmatprep.subr.bf16.mxu0 %v2926_v22 }
 0x494   : > { %v1837_v32 = vadd.f32 %v1836_v57, %v1835_v54 }
 0x496   : > { %v1838_v62 = vrot.slane %v1837_v32, 1 }
 0x498   : > { %v1839_v4 = vadd.f32 %v1838_v62, %v1837_v32 }
 0x499   : > { %2772 = vmatmul.mubr.msk.f32.vlgmr.msra.gmra.mrb[10].mxu0 %vm1275_vm10, %v2768_v5  ;;  %v1840_v5 = vld [vmem:[%s3947_s10] sm:$0x1] }
 0x49a   : > { %2775 = vmatpush3.bf16.msra.mxu0 %v2926_v22  ;;  %v1841_v8 = vadd.f32 %v1840_v5, %v1839_v4 }
 0x49b   : > { %2776 = vmatprep.subr.bf16.mxu0 %v2927_v25 }
 0x49c   : > { %v1842_v10 = vmax.f32 %v1841_v8, 0.0 }
 0x49e   : > { %2777 = vmatpush3.bf16.msra.mxu0 %v2927_v25 }
 0x49f   : > { %2778 = vmatprep.subr.bf16.mxu0 %v2928_v29 }
 0x4a2   : > { %2779 = vmatpush3.bf16.msra.mxu0 %v2928_v29 }
 0x4a3   : > { %2780 = vmatprep.subr.bf16.mxu0 %v2929_v31 }
 0x4a6   : > { %2781 = vmatpush3.bf16.msra.mxu0 %v2929_v31 }
 0x4a7   : > { %2782 = vmatprep.subr.bf16.mxu0 %v2930_v35 }
 0x4aa   : > { %2783 = vmatpush3.bf16.msra.mxu0 %v2930_v35 }
 0x4ab   : > { %2784 = vmatprep.subr.bf16.mxu0 %v2931_v37 }
 0x4ae   : > { %2785 = vmatpush3.bf16.msra.mxu0 %v2931_v37 }
 0x4af   : > { %2786 = vmatprep.subr.bf16.mxu0 %v2932_v39 }
 0x4b2   : > { %2787 = vmatpush3.bf16.msra.mxu0 %v2932_v39 }
 0x4b3   : > { %2788 = vmatprep.subr.bf16.mxu0 %v2933_v42 }
 0x4b6   : > { %2789 = vmatpush3.bf16.msra.mxu0 %v2933_v42 }
 0x56c   : > { %v2773_v12 = vpop.f32.mrb[10].mxu0 }
 0x56d   : > { %v1766_v13 = vadd.f32 %v2773_v12, %v1764_v11  ;;  %v1753_v14 = vpop.f32.mrb[11].mxu0 }
 0x56e   : > { %v1765_v26 = vadd.f32 %v1764_v11, %v1753_v14 }
 0x56f   : > { %v3681_v63 = vmax.f32 %v1766_v13, 0.0  ;;  %v3747_v13 = vrot.slane %v1842_v10, %v3678_v15 }
 0x570   : > { %v1767_v34 = vmax.f32 %v1765_v26, 0.0 }
 0x571   : > { %v1934_v0 = vrot.slane %v3681_v63, %v3678_v15  ;;  %v1956_v17 = vrot.slane %v3681_v63, %v1867_v16  ;;  %v1967_v19 = vrot.slane %v3681_v63, %v1878_v18  ;;  %v1945_v23 = vrot.slane %v3681_v63, %v1856_v20 }
 0x572   : > { %v1978_v24 = vrot.slane %v3681_v63, %v1889_v21  ;;  %v1989_v27 = vrot.slane %v3681_v63, %v1900_v33  ;;  %v2000_v30 = vrot.slane %v3681_v63, %v1911_v28  ;;  %v1846_v1 = vrot.slane %v1767_v34, %v3678_v15 }
 0x573   : > { %1936 = vbcast.lane.b32.xlu1 %v1934_v0, 256  ;;  %1958 = vbcast.lane.b32.xlu0 %v1956_v17, 256  ;;  %v1857_v36 = vrot.slane %v1767_v34, %v1856_v20  ;;  %v1868_v38 = vrot.slane %v1767_v34, %v1867_v16  ;;  %v1912_v40 = vrot.slane %v1767_v34, %v1911_v28 }
 0x574   : > { %v1879_v41 = vrot.slane %v1767_v34, %v1878_v18  ;;  %v1890_v43 = vrot.slane %v1767_v34, %v1889_v21  ;;  %v1923_v45 = vrot.slane %v1767_v34, %v1922_v44  ;;  %v1901_v46 = vrot.slane %v1767_v34, %v1900_v33 }
 0x575   : > { %v2011_v47 = vrot.slane %v3681_v63, %v1922_v44 }
 0x577   : > { %1940 = vbcast.lane.b32.xlu1 %v1934_v0, 264  ;;  %1969 = vbcast.lane.b32.xlu0 %v1967_v19, 256 }
 0x57b   : > { %1947 = vbcast.lane.b32.xlu1 %v1945_v23, 256  ;;  %1980 = vbcast.lane.b32.xlu0 %v1978_v24, 256 }
 0x57f   : > { %1951 = vbcast.lane.b32.xlu1 %v1945_v23, 264  ;;  %1991 = vbcast.lane.b32.xlu0 %v1989_v27, 256 }
 0x583   : > { %1962 = vbcast.lane.b32.xlu1 %v1956_v17, 264  ;;  %2002 = vbcast.lane.b32.xlu0 %v2000_v30, 256 }
 0x587   : > { %1973 = vbcast.lane.b32.xlu1 %v1967_v19, 264  ;;  %1848 = vbcast.lane.b32.xlu0 %v1846_v1, 256 }
 0x58b   : > { %1984 = vbcast.lane.b32.xlu1 %v1978_v24, 264  ;;  %1859 = vbcast.lane.b32.xlu0 %v1857_v36, 256 }
 0x58f   : > { %1995 = vbcast.lane.b32.xlu1 %v1989_v27, 264  ;;  %1870 = vbcast.lane.b32.xlu0 %v1868_v38, 256 }
 0x593   : > { %1914 = vbcast.lane.b32.xlu1 %v1912_v40, 256  ;;  %1881 = vbcast.lane.b32.xlu0 %v1879_v41, 256 }
 0x597   : > { %1918 = vbcast.lane.b32.xlu1 %v1912_v40, 264  ;;  %1892 = vbcast.lane.b32.xlu0 %v1890_v43, 256 }
 0x59b   : > { %1925 = vbcast.lane.b32.xlu1 %v1923_v45, 256  ;;  %1903 = vbcast.lane.b32.xlu0 %v1901_v46, 256 }
 0x59f   : > { %1929 = vbcast.lane.b32.xlu1 %v1923_v45, 264  ;;  %2013 = vbcast.lane.b32.xlu0 %v2011_v47, 256 }
 0x5a3   : > { %2006 = vbcast.lane.b32.xlu1 %v2000_v30, 264 }
 0x5a7   : > { %1852 = vbcast.lane.b32.xlu1 %v1846_v1, 264 }
 0x5ab   : > { %1863 = vbcast.lane.b32.xlu1 %v1857_v36, 264 }
 0x5af   : > { %1874 = vbcast.lane.b32.xlu1 %v1868_v38, 264 }
 0x5b3   : > { %1885 = vbcast.lane.b32.xlu1 %v1879_v41, 264 }
 0x5b7   : > { %1896 = vbcast.lane.b32.xlu1 %v1890_v43, 264 }
 0x5bb   : > { %1907 = vbcast.lane.b32.xlu1 %v1901_v46, 264 }
 0x5bf   : > { %2017 = vbcast.lane.b32.xlu1 %v2011_v47, 264 }
 0x5e5   : > { %v1937_v51 = vpop.permute.xlu1 %1936  ;;  %v1959_v55 = vpop.permute.xlu0 %1958 }
 0x5e6   : > { %v2039_v15 = vmul.f32 %v3747_v13, %v1937_v51  ;;  %v2043_v1 = vmul.f32 %v3747_v13, %v1959_v55 }
 0x5e9   : > { %v1941_v53 = vpop.permute.xlu1 %1940  ;;  %v1970_v59 = vpop.permute.xlu0 %1969 }
 0x5ea   : > { %v2040_v19 = vmul.f32 %v3747_v13, %v1941_v53  ;;  %v2045_v46 = vmul.f32 %v3747_v13, %v1970_v59 }
 0x5ec   : > { %v2063_v33 = vpack.c.bf16 %v2040_v19, %v2039_v15 }
 0x5ed   : > { %v1948_v56 = vpop.permute.xlu1 %1947  ;;  %v1981_v2 = vpop.permute.xlu0 %1980 }
 0x5ee   : > { %v2041_v34 = vmul.f32 %v3747_v13, %v1948_v56  ;;  %v2047_v60 = vmul.f32 %v3747_v13, %v1981_v2 }
 0x5f1   : > { %v1952_v58 = vpop.permute.xlu1 %1951  ;;  %v3742_v7 = vpop.permute.xlu0 %1991 }
 0x5f2   : > { %v2042_v27 = vmul.f32 %v3747_v13, %v1952_v58 }
 0x5f4   : > { %v2064_v35 = vpack.c.bf16 %v2042_v27, %v2041_v34 }
 0x5f5   : > { %v1963_v61 = vpop.permute.xlu1 %1962  ;;  %v3744_v11 = vpop.permute.xlu0 %2002 }
 0x5f6   : > { %v2044_v28 = vmul.f32 %v3747_v13, %v1963_v61  ;;  %v2049_v61 = vmul.f32 %v3747_v13, %v3742_v7 }
 0x5f8   : > { %v2065_v37 = vpack.c.bf16 %v2044_v28, %v2043_v1 }
 0x5f9   : > { %v1974_v3 = vpop.permute.xlu1 %1973  ;;  %v1849_v0 = vpop.permute.xlu0 %1848 }
 0x5fa   : > { %v2023_v30 = vmul.f32 %v3747_v13, %v1849_v0  ;;  %v2046_v42 = vmul.f32 %v3747_v13, %v1974_v3  ;;  %v2051_v3 = vmul.f32 %v3747_v13, %v3744_v11  ;;  %v3786_v0 = vld [vmem:[%s3949_s12] ss:$0 sm:$0xff] }
 0x5fc   : > { %v2066_v50 = vpack.c.bf16 %v2046_v42, %v2045_v46 }
 0x5fd   : > { %v1985_v6 = vpop.permute.xlu1 %1984  ;;  %v1860_v20 = vpop.permute.xlu0 %1859 }
 0x5fe   : > { %v2025_v40 = vmul.f32 %v3747_v13, %v1860_v20  ;;  %v2048_v44 = vmul.f32 %v3747_v13, %v1985_v6 }
 0x600   : > { %v2067_v52 = vpack.c.bf16 %v2048_v44, %v2047_v60 }
 0x601   : > { %v1996_v9 = vpop.permute.xlu1 %1995  ;;  %v1871_v26 = vpop.permute.xlu0 %1870 }
 0x602   : > { %v2027_v47 = vmul.f32 %v3747_v13, %v1871_v26  ;;  %v2050_v56 = vmul.f32 %v3747_v13, %v1996_v9 }
 0x604   : > { %v2068_v4 = vpack.c.bf16 %v2050_v56, %v2049_v61 }
 0x605   : > { %v1915_v12 = vpop.permute.xlu1 %1914  ;;  %v1882_v38 = vpop.permute.xlu0 %1881 }
 0x606   : > { %v2035_v16 = vmul.f32 %v3747_v13, %v1915_v12  ;;  %v2029_v54 = vmul.f32 %v3747_v13, %v1882_v38 }
 0x609   : > { %v1919_v14 = vpop.permute.xlu1 %1918  ;;  %v1893_v49 = vpop.permute.xlu0 %1892 }
 0x60a   : > { %v2036_v63 = vmul.f32 %v3747_v13, %v1919_v14  ;;  %v2031_v62 = vmul.f32 %v3747_v13, %v1893_v49 }
 0x60c   : > { %v2061_v17 = vpack.c.bf16 %v2036_v63, %v2035_v16 }
 0x60d   : > { %v1926_v18 = vpop.permute.xlu1 %1925  ;;  %v1904_v58 = vpop.permute.xlu0 %1903 }
 0x60e   : > { %2802 = vmatprep.mubr.bf16.mxu1 %v2061_v17  ;;  %v2037_v22 = vmul.f32 %v3747_v13, %v1926_v18  ;;  %v2033_v9 = vmul.f32 %v3747_v13, %v1904_v58 }
 0x611   : > { %v1930_v21 = vpop.permute.xlu1 %1929  ;;  %v2014_v12 = vpop.permute.xlu0 %2013 }
 0x612   : > { %v2038_v23 = vmul.f32 %v3747_v13, %v1930_v21  ;;  %v2053_v16 = vmul.f32 %v3747_v13, %v2014_v12 }
 0x614   : > { %v2062_v24 = vpack.c.bf16 %v2038_v23, %v2037_v22 }
 0x615   : > { %v2007_v25 = vpop.permute.xlu1 %2006 }
 0x616   : > { %2803 = vmatmul.mubr.bf16.vlgmr.msra.gmra.mrb[8].mxu1 %v2062_v24  ;;  %v2052_v59 = vmul.f32 %v3747_v13, %v2007_v25 }
 0x617   : > { %2806 = vmatprep.mubr.bf16.mxu1 %v2063_v33 }
 0x618   : > { %v2069_v6 = vpack.c.bf16 %v2052_v59, %v2051_v3 }
 0x619   : > { %v1853_v29 = vpop.permute.xlu1 %1852 }
 0x61a   : > { %v2024_v31 = vmul.f32 %v3747_v13, %v1853_v29 }
 0x61c   : > { %v2055_v36 = vpack.c.bf16 %v2024_v31, %v2023_v30 }
 0x61d   : > { %v1864_v39 = vpop.permute.xlu1 %1863 }
 0x61e   : > { %v2026_v41 = vmul.f32 %v3747_v13, %v1864_v39  ;;  %2790 = vmatprep.mubr.bf16.mxu0 %v2055_v36  ;;  %2807 = vmatmul.mubr.bf16.gmra.mrb[12].mxu1 %v2064_v35 }
 0x61f   : > { %2810 = vmatprep.mubr.bf16.mxu1 %v2065_v37 }
 0x620   : > { %v2056_v43 = vpack.c.bf16 %v2026_v41, %v2025_v40 }
 0x621   : > { %v1875_v45 = vpop.permute.xlu1 %1874 }
 0x622   : > { %v2028_v48 = vmul.f32 %v3747_v13, %v1875_v45  ;;  %2791 = vmatmul.mubr.bf16.vlgmr.msra.gmra.mrb[12].mxu0 %v2056_v43 }
 0x624   : > { %v2057_v51 = vpack.c.bf16 %v2028_v48, %v2027_v47 }
 0x625   : > { %v1886_v53 = vpop.permute.xlu1 %1885 }
 0x626   : > { %v2030_v55 = vmul.f32 %v3747_v13, %v1886_v53  ;;  %2794 = vmatprep.mubr.bf16.mxu0 %v2057_v51  ;;  %2811 = vmatmul.mubr.bf16.gmra.mrb[16].mxu1 %v2066_v50 }
 0x627   : > { %2814 = vmatprep.mubr.bf16.mxu1 %v2067_v52 }
 0x628   : > { %v2058_v57 = vpack.c.bf16 %v2030_v55, %v2029_v54 }
 0x629   : > { %v1897_v32 = vpop.permute.xlu1 %1896 }
 0x62a   : > { %v2032_v2 = vmul.f32 %v3747_v13, %v1897_v32  ;;  %2795 = vmatmul.mubr.bf16.gmra.mrb[16].mxu0 %v2058_v57 }
 0x62c   : > { %v2059_v5 = vpack.c.bf16 %v2032_v2, %v2031_v62 }
 0x62d   : > { %v1908_v8 = vpop.permute.xlu1 %1907 }
 0x62e   : > { %v2034_v10 = vmul.f32 %v3747_v13, %v1908_v8  ;;  %2798 = vmatprep.mubr.bf16.mxu0 %v2059_v5  ;;  %2815 = vmatmul.mubr.bf16.gmra.mrb[20].mxu1 %v2068_v4 }
 0x62f   : > { %2818 = vmatprep.mubr.bf16.mxu1 %v2069_v6 }
 0x630   : > { %v2060_v7 = vpack.c.bf16 %v2034_v10, %v2033_v9 }
 0x631   : > { %v2018_v14 = vpop.permute.xlu1 %2017 }
 0x632   : > { %v2054_v63 = vmul.f32 %v3747_v13, %v2018_v14  ;;  %2799 = vmatmul.mubr.bf16.gmra.mrb[20].mxu0 %v2060_v7 }
 0x634   : > { %v2070_v11 = vpack.c.bf16 %v2054_v63, %v2053_v16 }
 0x636   : > { %2819 = vmatmul.mubr.bf16.gmra.mrb[24].mxu1 %v2070_v11 }
 0x6e9   : > { %v2804_v17 = vpop.f32.mrb[8].mxu1 }
 0x6ea   : > { %v2233_v18 = vadd.f32 %v2804_v17, %v3786_v0  ;;  %v2224_v19 = vpop.f32.mrb[9].mxu1 }
 0x6eb   : > { %v2225_v20 = vadd.f32 %v3786_v0, %v2224_v19  ;;  %v2805_v21 = vpop.f32.mrb[10].mxu1 }
 0x6ec   : > { %v2317_v22 = vsub.f32 0.0, %v2233_v18  ;;  %v2236_v23 = vadd.f32 %v2805_v21, %v3786_v0  ;;  %v2227_v15 = vpop.f32.mrb[11].mxu1 }
 0x6ed   : > { %v2315_v13 = vsub.f32 0.0, %v2225_v20  ;;  %v2228_v24 = vadd.f32 %v3786_v0, %v2227_v15 }
 0x6ee   : > { %v2363_v33 = vmul.f32 1.442695, %v2317_v22  ;;  %v2318_v25 = vsub.f32 0.0, %v2236_v23 }
 0x6ef   : > { %v2359_v26 = vmul.f32 1.442695, %v2315_v13  ;;  %v2316_v27 = vsub.f32 0.0, %v2228_v24 }
 0x6f0   : > { %2934 = vpow2.f32 %v2363_v33  ;;  %v2365_v28 = vmul.f32 1.442695, %v2318_v25 }
 0x6f1   : > { %2936 = vpow2.f32 %v2359_v26  ;;  %v2361_v29 = vmul.f32 1.442695, %v2316_v27  ;;  %v2808_v34 = vpop.f32.mrb[12].mxu1 }
 0x6f2   : > { %2938 = vpow2.f32 %v2365_v28  ;;  %v2249_v30 = vadd.f32 %v2808_v34, %v3786_v0  ;;  %v2240_v31 = vpop.f32.mrb[13].mxu1 }
 0x6f3   : > { %2940 = vpow2.f32 %v2361_v29  ;;  %v2241_v1 = vadd.f32 %v3786_v0, %v2240_v31  ;;  %v2809_v35 = vpop.f32.mrb[14].mxu1 }
 0x6f4   : > { %v2321_v36 = vsub.f32 0.0, %v2249_v30  ;;  %v2252_v37 = vadd.f32 %v2809_v35, %v3786_v0  ;;  %v2243_v38 = vpop.f32.mrb[15].mxu1 }
 0x6f5   : > { %v2319_v39 = vsub.f32 0.0, %v2241_v1  ;;  %v2244_v40 = vadd.f32 %v3786_v0, %v2243_v38  ;;  %v2792_v41 = vpop.f32.mrb[12].mxu0 }
 0x6f6   : > { %v2371_v42 = vmul.f32 1.442695, %v2321_v36  ;;  %v2322_v43 = vsub.f32 0.0, %v2252_v37  ;;  %v2185_v44 = vadd.f32 %v2792_v41, %v3786_v0  ;;  %v2176_v45 = vpop.f32.mrb[13].mxu0 }
 0x6f7   : > { %v2367_v46 = vmul.f32 1.442695, %v2319_v39  ;;  %v2320_v47 = vsub.f32 0.0, %v2244_v40  ;;  %v2177_v48 = vadd.f32 %v3786_v0, %v2176_v45  ;;  %v2793_v60 = vpop.f32.mrb[14].mxu0 }
 0x6f8   : > { %2942 = vpow2.f32 %v2371_v42  ;;  %v2373_v49 = vmul.f32 1.442695, %v2322_v43  ;;  %v2305_v50 = vsub.f32 0.0, %v2185_v44  ;;  %v2188_v51 = vadd.f32 %v2793_v60, %v3786_v0  ;;  %v2179_v52 = vpop.f32.mrb[15].mxu0 }
 0x6f9   : > { %2944 = vpow2.f32 %v2367_v46  ;;  %v2369_v53 = vmul.f32 1.442695, %v2320_v47  ;;  %v2303_v54 = vsub.f32 0.0, %v2177_v48  ;;  %v2180_v55 = vadd.f32 %v3786_v0, %v2179_v52  ;;  %v2812_v56 = vpop.f32.mrb[16].mxu1 }
 0x6fa   : > { %v2935_v57 = vpop.eup %2934  ;;  %2946 = vpow2.f32 %v2373_v49  ;;  %v2339_v58 = vmul.f32 1.442695, %v2305_v50  ;;  %v2306_v59 = vsub.f32 0.0, %v2188_v51  ;;  %v2265_v32 = vadd.f32 %v2812_v56, %v3786_v0  ;;  %v2256_v61 = vpop.f32.mrb[17].mxu1 }
 0x6fb   : > { %v2937_v62 = vpop.eup %2936  ;;  %v2413_v2 = vadd.f32 1.0, %v2935_v57  ;;  %2948 = vpow2.f32 %v2369_v53  ;;  %v2304_v3 = vsub.f32 0.0, %v2180_v55  ;;  %v2813_v4 = vpop.f32.mrb[18].mxu1  ;;  %v2335_v7 = vmul.f32 1.442695, %v2303_v54 }
 0x6fc   : > { %v2939_v5 = vpop.eup %2938  ;;  %v2411_v6 = vadd.f32 1.0, %v2937_v62  ;;  %2950 = vpow2.f32 %v2339_v58  ;;  %v2325_v8 = vsub.f32 0.0, %v2265_v32  ;;  %v2259_v9 = vpop.f32.mrb[19].mxu1  ;;  %v2341_v63 = vmul.f32 1.442695, %v2306_v59 }
 0x6fd   : > { %v2941_v10 = vpop.eup %2940  ;;  %2952 = vrcp.f32 %v2413_v2  ;;  %v2414_v12 = vadd.f32 1.0, %v2939_v5  ;;  %v2796_v14 = vpop.f32.mrb[16].mxu0  ;;  %v2257_v11 = vadd.f32 %v3786_v0, %v2256_v61  ;;  %v2337_v18 = vmul.f32 1.442695, %v2304_v3 }
 0x6fe   : > { %2954 = vrcp.f32 %v2411_v6  ;;  %v2412_v16 = vadd.f32 1.0, %v2941_v10  ;;  %v2192_v17 = vpop.f32.mrb[17].mxu0  ;;  %v2268_v19 = vadd.f32 %v2813_v4, %v3786_v0  ;;  %v2379_v21 = vmul.f32 1.442695, %v2325_v8 }
 0x6ff   : > { %2956 = vrcp.f32 %v2414_v12  ;;  %v2797_v20 = vpop.f32.mrb[18].mxu0  ;;  %v2260_v22 = vadd.f32 %v3786_v0, %v2259_v9  ;;  %v2201_v15 = vadd.f32 %v2796_v14, %v3786_v0  ;;  %v2323_v33 = vsub.f32 0.0, %v2257_v11 }
 0x700   : > { %2958 = vrcp.f32 %v2412_v16  ;;  %v2195_v23 = vpop.f32.mrb[19].mxu0  ;;  %v2326_v28 = vsub.f32 0.0, %v2268_v19  ;;  %v2193_v42 = vadd.f32 %v3786_v0, %v2192_v17  ;;  %v2204_v47 = vadd.f32 %v2797_v20, %v3786_v0 }
 0x701   : > { %2960 = vpow2.f32 %v2335_v7  ;;  %v2816_v13 = vpop.f32.mrb[20].mxu1  ;;  %v2324_v31 = vsub.f32 0.0, %v2260_v22  ;;  %v2309_v37 = vsub.f32 0.0, %v2201_v15  ;;  %v2375_v41 = vmul.f32 1.442695, %v2323_v33 }
 0x702   : > { %v2943_v24 = vpop.eup %2942  ;;  %2962 = vpow2.f32 %v2341_v63  ;;  %v2272_v25 = vpop.f32.mrb[21].mxu1  ;;  %v2381_v46 = vmul.f32 1.442695, %v2326_v28  ;;  %v2196_v50 = vadd.f32 %v3786_v0, %v2195_v23  ;;  %v2281_v54 = vadd.f32 %v2816_v13, %v3786_v0 }
 0x703   : > { %v2945_v26 = vpop.eup %2944  ;;  %v2417_v27 = vadd.f32 1.0, %v2943_v24  ;;  %2964 = vpow2.f32 %v2337_v18  ;;  %v3805_v29 = vpop.f32.mrb[22].mxu1  ;;  %v2377_v49 = vmul.f32 1.442695, %v2324_v31  ;;  %v2347_v53 = vmul.f32 1.442695, %v2309_v37 }
 0x704   : > { %v2947_v34 = vpop.eup %2946  ;;  %v2415_v30 = vadd.f32 1.0, %v2945_v26  ;;  %2966 = vpow2.f32 %v2379_v21  ;;  %v3807_v1 = vpop.f32.mrb[23].mxu1  ;;  %v2307_v57 = vsub.f32 0.0, %v2193_v42  ;;  %v2273_v58 = vadd.f32 %v3786_v0, %v2272_v25 }
 0x705   : > { %v2949_v35 = vpop.eup %2948  ;;  %2968 = vrcp.f32 %v2417_v27  ;;  %v2418_v36 = vadd.f32 1.0, %v2947_v34  ;;  %v3809_v38 = vpop.f32.mrb[20].mxu0  ;;  %v2310_v61 = vsub.f32 0.0, %v2204_v47  ;;  %v2308_v4 = vsub.f32 0.0, %v2196_v50 }
 0x706   : > { %v2951_v39 = vpop.eup %2950  ;;  %2970 = vrcp.f32 %v2415_v30  ;;  %v2416_v40 = vadd.f32 1.0, %v2949_v35  ;;  %v3812_v43 = vpop.f32.mrb[21].mxu0  ;;  %v2329_v9 = vsub.f32 0.0, %v2281_v54  ;;  %v2343_v7 = vmul.f32 1.442695, %v2307_v57 }
 0x707   : > { %v2953_v44 = vpop.eup %2952  ;;  %2972 = vrcp.f32 %v2418_v36  ;;  %v2401_v45 = vadd.f32 1.0, %v2951_v39  ;;  %v3815_v48 = vpop.f32.mrb[22].mxu0  ;;  %v2327_v14 = vsub.f32 0.0, %v2273_v58  ;;  %v2349_v11 = vmul.f32 1.442695, %v2310_v61 }
 0x708   : > { %v2955_v60 = vpop.eup %2954  ;;  %2477 = vst [vmem:[%s3819_s14 + $0x70] sm:$0xff] %v2953_v44  ;;  %2974 = vrcp.f32 %v2416_v40  ;;  %v3823_v51 = vpop.f32.mrb[23].mxu0  ;;  %v2284_v17 = vadd.f32 %v3805_v29, %v3786_v0  ;;  %v2345_v19 = vmul.f32 1.442695, %v2308_v4  ;;  %v2276_v20 = vadd.f32 %v3786_v0, %v3807_v1 }
 0x709   : > { %v2957_v52 = vpop.eup %2956  ;;  %2475 = vst [vmem:[%s3819_s14 + $0x60] sm:$0xff] %v2955_v60  ;;  %2976 = vrcp.f32 %v2401_v45  ;;  %v3827_v55 = vpop.f32.mrb[24].mxu1  ;;  %v2387_v22 = vmul.f32 1.442695, %v2329_v9  ;;  %v2217_v23 = vadd.f32 %v3809_v38, %v3786_v0  ;;  %v2383_v13 = vmul.f32 1.442695, %v2327_v14 }
 0x70a   : > { %v2959_v56 = vpop.eup %2958  ;;  %2478 = vst [vmem:[%s3819_s14 + $0x78] sm:$0xff] %v2957_v52  ;;  %2978 = vpow2.f32 %v2375_v41  ;;  %v3831_v59 = vpop.f32.mrb[25].mxu1  ;;  %v2209_v24 = vadd.f32 %v3786_v0, %v3812_v43  ;;  %v2330_v25 = vsub.f32 0.0, %v2284_v17  ;;  %v2328_v27 = vsub.f32 0.0, %v2276_v20 }
 0x70b   : > { %v2961_v32 = vpop.eup %2960  ;;  %2476 = vst [vmem:[%s3819_s14 + $0x68] sm:$0xff] %v2959_v56  ;;  %2980 = vpow2.f32 %v2381_v46  ;;  %v3834_v62 = vpop.f32.mrb[26].mxu1  ;;  %v2313_v34 = vsub.f32 0.0, %v2217_v23  ;;  %v2220_v41 = vadd.f32 %v3815_v48, %v3786_v0  ;;  %v2212_v44 = vadd.f32 %v3786_v0, %v3823_v51 }
 0x70c   : > { %v2963_v2 = vpop.eup %2962  ;;  %v2399_v3 = vadd.f32 1.0, %v2961_v32  ;;  %2982 = vpow2.f32 %v2377_v49  ;;  %v3836_v5 = vpop.f32.mrb[27].mxu1  ;;  %v2311_v1 = vsub.f32 0.0, %v2209_v24  ;;  %v2389_v37 = vmul.f32 1.442695, %v2330_v25 }
 0x70d   : > { %v2965_v6 = vpop.eup %2964  ;;  %v2402_v8 = vadd.f32 1.0, %v2963_v2  ;;  %2984 = vpow2.f32 %v2347_v53  ;;  %v2385_v40 = vmul.f32 1.442695, %v2328_v27  ;;  %v2355_v43 = vmul.f32 1.442695, %v2313_v34 }
 0x70e   : > { %v2967_v10 = vpop.eup %2966  ;;  %2986 = vrcp.f32 %v2399_v3  ;;  %v2400_v12 = vadd.f32 1.0, %v2965_v6  ;;  %v2351_v46 = vmul.f32 1.442695, %v2311_v1  ;;  %v2297_v47 = vadd.f32 %v3827_v55, %v3786_v0 }
 0x70f   : > { %v2969_v16 = vpop.eup %2968  ;;  %2988 = vrcp.f32 %v2402_v8  ;;  %v2421_v63 = vadd.f32 1.0, %v2967_v10  ;;  %v2289_v48 = vadd.f32 %v3786_v0, %v3831_v59  ;;  %v2314_v50 = vsub.f32 0.0, %v2220_v41 }
 0x710   : > { %v2971_v18 = vpop.eup %2970  ;;  %2481 = vst [vmem:[%s3819_s14 + $0x90] sm:$0xff] %v2969_v16  ;;  %2990 = vrcp.f32 %v2400_v12  ;;  %v2312_v51 = vsub.f32 0.0, %v2212_v44  ;;  %v2333_v57 = vsub.f32 0.0, %v2297_v47  ;;  %v2300_v3 = vadd.f32 %v3834_v62, %v3786_v0 }
 0x711   : > { %v2973_v21 = vpop.eup %2972  ;;  %2479 = vst [vmem:[%s3819_s14 + $0x80] sm:$0xff] %v2971_v18  ;;  %2992 = vrcp.f32 %v2421_v63  ;;  %v2331_v32 = vsub.f32 0.0, %v2289_v48  ;;  %v2357_v2 = vmul.f32 1.442695, %v2314_v50  ;;  %v2292_v9 = vadd.f32 %v3786_v0, %v3836_v5 }
 0x712   : > { %v2975_v15 = vpop.eup %2974  ;;  %2482 = vst [vmem:[%s3819_s14 + $0x98] sm:$0xff] %v2973_v21  ;;  %2994 = vpow2.f32 %v2343_v7  ;;  %v2353_v8 = vmul.f32 1.442695, %v2312_v51  ;;  %v2395_v12 = vmul.f32 1.442695, %v2333_v57  ;;  %v2334_v62 = vsub.f32 0.0, %v2300_v3 }
 0x713   : > { %v2977_v33 = vpop.eup %2976  ;;  %2480 = vst [vmem:[%s3819_s14 + $0x88] sm:$0xff] %v2975_v15  ;;  %2996 = vpow2.f32 %v2349_v11  ;;  %v2391_v14 = vmul.f32 1.442695, %v2331_v32  ;;  %v2332_v11 = vsub.f32 0.0, %v2292_v9 }
 0x714   : > { %v2979_v26 = vpop.eup %2978  ;;  %2465 = vst [vmem:[%s3819_s14 + $0x10] sm:$0xff] %v2977_v33  ;;  %2998 = vpow2.f32 %v2345_v19  ;;  %v2397_v21 = vmul.f32 1.442695, %v2334_v62 }
 0x715   : > { %v2981_v28 = vpop.eup %2980  ;;  %v2419_v29 = vadd.f32 1.0, %v2979_v26  ;;  %3000 = vpow2.f32 %v2387_v22  ;;  %v2393_v15 = vmul.f32 1.442695, %v2332_v11 }
 0x716   : > { %v2983_v30 = vpop.eup %2982  ;;  %v2422_v31 = vadd.f32 1.0, %v2981_v28  ;;  %3002 = vpow2.f32 %v2383_v13 }
 0x717   : > { %v2985_v35 = vpop.eup %2984  ;;  %3004 = vrcp.f32 %v2419_v29  ;;  %v2420_v36 = vadd.f32 1.0, %v2983_v30 }
 0x718   : > { %v2987_v38 = vpop.eup %2986  ;;  %3006 = vrcp.f32 %v2422_v31  ;;  %v2405_v39 = vadd.f32 1.0, %v2985_v35 }
 0x719   : > { %v2989_v42 = vpop.eup %2988  ;;  %2463 = vst [vmem:[%s3819_s14] sm:$0xff] %v2987_v38  ;;  %3008 = vrcp.f32 %v2420_v36 }
 0x71a   : > { %v2991_v45 = vpop.eup %2990  ;;  %2466 = vst [vmem:[%s3819_s14 + $0x18] sm:$0xff] %v2989_v42  ;;  %3010 = vrcp.f32 %v2405_v39 }
 0x71b   : > { %v2993_v60 = vpop.eup %2992  ;;  %2464 = vst [vmem:[%s3819_s14 + $0x8] sm:$0xff] %v2991_v45  ;;  %3012 = vpow2.f32 %v2389_v37 }
 0x71c   : > { %v2995_v49 = vpop.eup %2994  ;;  %2485 = vst [vmem:[%s3819_s14 + $0xb0] sm:$0xff] %v2993_v60  ;;  %3014 = vpow2.f32 %v2385_v40 }
 0x71d   : > { %v2997_v52 = vpop.eup %2996  ;;  %v2403_v53 = vadd.f32 1.0, %v2995_v49  ;;  %3016 = vpow2.f32 %v2355_v43 }
 0x71e   : > { %v2999_v54 = vpop.eup %2998  ;;  %v2406_v56 = vadd.f32 1.0, %v2997_v52  ;;  %3018 = vpow2.f32 %v2351_v46 }
 0x71f   : > { %v3001_v55 = vpop.eup %3000  ;;  %3020 = vrcp.f32 %v2403_v53  ;;  %v2404_v58 = vadd.f32 1.0, %v2999_v54 }
 0x720   : > { %v3003_v61 = vpop.eup %3002  ;;  %3022 = vrcp.f32 %v2406_v56  ;;  %v2425_v59 = vadd.f32 1.0, %v3001_v55 }
 0x721   : > { %v3005_v4 = vpop.eup %3004  ;;  %3024 = vrcp.f32 %v2404_v58  ;;  %v2423_v6 = vadd.f32 1.0, %v3003_v61 }
 0x722   : > { %v3007_v10 = vpop.eup %3006  ;;  %2483 = vst [vmem:[%s3819_s14 + $0xa0] sm:$0xff] %v3005_v4  ;;  %3026 = vrcp.f32 %v2425_v59 }
 0x723   : > { %v3009_v7 = vpop.eup %3008  ;;  %2486 = vst [vmem:[%s3819_s14 + $0xb8] sm:$0xff] %v3007_v10  ;;  %3028 = vrcp.f32 %v2423_v6 }
 0x724   : > { %v3011_v16 = vpop.eup %3010  ;;  %2484 = vst [vmem:[%s3819_s14 + $0xa8] sm:$0xff] %v3009_v7  ;;  %3030 = vpow2.f32 %v2357_v2 }
 0x725   : > { %v3013_v63 = vpop.eup %3012  ;;  %2469 = vst [vmem:[%s3819_s14 + $0x30] sm:$0xff] %v3011_v16  ;;  %3032 = vpow2.f32 %v2353_v8 }
 0x726   : > { %v3015_v17 = vpop.eup %3014  ;;  %v2426_v18 = vadd.f32 1.0, %v3013_v63  ;;  %3034 = vpow2.f32 %v2395_v12 }
 0x727   : > { %v3017_v0 = vpop.eup %3016  ;;  %v2424_v5 = vadd.f32 1.0, %v3015_v17  ;;  %3036 = vpow2.f32 %v2391_v14 }
 0x728   : > { %v3019_v19 = vpop.eup %3018  ;;  %3038 = vrcp.f32 %v2426_v18  ;;  %v2409_v20 = vadd.f32 1.0, %v3017_v0 }
 0x729   : > { %v3021_v22 = vpop.eup %3020  ;;  %3040 = vrcp.f32 %v2424_v5  ;;  %v2407_v23 = vadd.f32 1.0, %v3019_v19 }
 0x72a   : > { %v3023_v13 = vpop.eup %3022  ;;  %2467 = vst [vmem:[%s3819_s14 + $0x20] sm:$0xff] %v3021_v22  ;;  %3042 = vrcp.f32 %v2409_v20 }
 0x72b   : > { %v3025_v24 = vpop.eup %3024  ;;  %2470 = vst [vmem:[%s3819_s14 + $0x38] sm:$0xff] %v3023_v13  ;;  %3044 = vrcp.f32 %v2407_v23 }
 0x72c   : > { %v3027_v33 = vpop.eup %3026  ;;  %2468 = vst [vmem:[%s3819_s14 + $0x28] sm:$0xff] %v3025_v24  ;;  %3046 = vpow2.f32 %v2397_v21 }
 0x72d   : > { %v3029_v25 = vpop.eup %3028  ;;  %2489 = vst [vmem:[%s3819_s14 + $0xd0] sm:$0xff] %v3027_v33  ;;  %3048 = vpow2.f32 %v2393_v15 }
 0x72e   : > { %v3031_v26 = vpop.eup %3030  ;;  %2487 = vst [vmem:[%s3819_s14 + $0xc0] sm:$0xff] %v3029_v25 }
 0x72f   : > { %v3033_v27 = vpop.eup %3032  ;;  %v2410_v28 = vadd.f32 1.0, %v3031_v26 }
 0x730   : > { %v3035_v29 = vpop.eup %3034  ;;  %v2408_v34 = vadd.f32 1.0, %v3033_v27 }
 0x731   : > { %v3037_v30 = vpop.eup %3036  ;;  %3050 = vrcp.f32 %v2410_v28  ;;  %v2429_v31 = vadd.f32 1.0, %v3035_v29 }
 0x732   : > { %v3039_v1 = vpop.eup %3038  ;;  %3052 = vrcp.f32 %v2408_v34  ;;  %v2427_v35 = vadd.f32 1.0, %v3037_v30 }
 0x733   : > { %v3041_v36 = vpop.eup %3040  ;;  %2490 = vst [vmem:[%s3819_s14 + $0xd8] sm:$0xff] %v3039_v1  ;;  %3054 = vrcp.f32 %v2429_v31 }
 0x734   : > { %v3043_v37 = vpop.eup %3042  ;;  %2488 = vst [vmem:[%s3819_s14 + $0xc8] sm:$0xff] %v3041_v36  ;;  %3056 = vrcp.f32 %v2427_v35 }
 0x735   : > { %v3045_v38 = vpop.eup %3044  ;;  %2473 = vst [vmem:[%s3819_s14 + $0x50] sm:$0xff] %v3043_v37 }
 0x736   : > { %v3047_v39 = vpop.eup %3046  ;;  %2471 = vst [vmem:[%s3819_s14 + $0x40] sm:$0xff] %v3045_v38 }
 0x737   : > { %v3049_v40 = vpop.eup %3048  ;;  %v2430_v41 = vadd.f32 1.0, %v3047_v39 }
 0x738   : > { %v2428_v42 = vadd.f32 1.0, %v3049_v40 }
 0x739   : > { %3058 = vrcp.f32 %v2430_v41 }
 0x73a   : > { %3060 = vrcp.f32 %v2428_v42 }
 0x73b   : > { %v3051_v43 = vpop.eup %3050 }
 0x73c   : > { %v3053_v44 = vpop.eup %3052  ;;  %2474 = vst [vmem:[%s3819_s14 + $0x58] sm:$0xff] %v3051_v43 }
 0x73d   : > { %v3055_v45 = vpop.eup %3054  ;;  %2472 = vst [vmem:[%s3819_s14 + $0x48] sm:$0xff] %v3053_v44 }
 0x73e   : > { %v3057_v46 = vpop.eup %3056  ;;  %2493 = vst [vmem:[%s3819_s14 + $0xf0] sm:$0xff] %v3055_v45 }
 0x73f   : > { %2491 = vst [vmem:[%s3819_s14 + $0xe0] sm:$0xff] %v3057_v46 }
 0x743   : > { %v3059_v47 = vpop.eup %3058 }
 0x744   : > { %v3061_v60 = vpop.eup %3060  ;;  %2494 = vst [vmem:[%s3819_s14 + $0xf8] sm:$0xff] %v3059_v47 }
 0x745   : > { %2492 = vst [vmem:[%s3819_s14 + $0xe8] sm:$0xff] %v3061_v60 }
 0x746   : > { %3120 = shalt.err (!%p3117_p11)
}
 0x747   : > { %s3121_s15 = scalar_lea.hbm %s3889_s23, 4096  ;;  %s3125_s14 = scalar_lea.hbm %s3978_s24, 8192 }
 0x748   : > { %p3122_p0 = scmp.ne.s32.totalorder %s3889_s23, %s3121_s15  ;;  %p3126_p6 = scmp.lt.u32.totalorder %s3889_s23, %s3978_s24 }
 0x749   : > { %p3127_p3 = scmp.lt.u32.totalorder %s3125_s14, %s3121_s15  ;;  %p3129_p5 = scmp.lt.u32.totalorder %s3121_s15, %s3889_s23 }
 0x74a   : > { %p3123_p2 = pnand %p3122_p0, %p3979_p12 }
 0x74b   : > { %p3128_p13 = por %p3127_p3, %p3126_p6 }
 0x74c   : > { %p3124_p7 = pneg %p3123_p2 }
 0x74d   : > { %p3130_p8 = por %p3129_p5, %p3128_p13 }
 0x74f   : > { %p3131_p9 = pnand %p3130_p8, %p3124_p7 }
 0x751   : > { %3134 = shalt.err (!%p3131_p9)
}
 0x752   : > { %s3188_s22 = smov 128   ;;  %s3189_s6 = smov 8  }
 0x753   : > { %2866 = dma.vmem_to_hbm [thread:$0]  (%p3979_p12), %s3891_s17, 4096, %s3889_s23, %s2496_s18, %s3188_s22, %s3188_s22, %s3189_s6  }
 0x754 PF: > { %s3980_s29 = sld [smem:[#allocation11_spill]]  ;;  %s3981_s30 = sld [smem:[#allocation15_spill]] }
 0x755   : > { %p3983_p1 = scmp.ge.s32.totalorder %s3177_s28, 2 }
 0x75a   : > { %s2524_s25 = sand.u32 1, %s3980_s29   ;;  %p3982_p10 = scmp.ne.s32.totalorder %s3981_s30, 0 }
 0x75b   : > { %s2525_s15 = scalar_lea.sflag [#allocation4], %s2524_s25 }
 0x75c   : > { %p2877_p4 = pnand %p3983_p1, %p3982_p10 }
 0x75e   : > { %3160 = dma.done.wait (!%p2877_p4), %s2525_s15, 4096  }
 0x75f   : > { %3162 = vsyncadd (!%p2877_p4), %s2525_s15, 4294963200  ;;  %s3984_s28 = sld [smem:[#allocation13_spill]]  ;;  %s3985_s16 = sld [smem:[#allocation12_spill]] }
 0x760   : > { %s3986_s27 = sld [smem:[#allocation14_spill]]  ;;  %s3987_s25 = smov %s3169_s26 }
 0x765   : > { %p27_p11 = scmp.ge.s32.totalorder %s3984_s28, 4   ;;  %s3988_s26 = smov %s3985_s16 }
 0x767   :  { %29 = sbr.rel (!%p27_p11) target bundleno = 9 (0x9), region = 122 }
 0x76e   :  { %2530 = vsyncpa [#allocation3], 1 }
 0x76f   :  { %2532 = vsyncpa [#allocation3 + $0x1], 1 }
 0x770   :  { %2533 = vsyncpa [#allocation4], 1 }
 0x771   :  { %2535 = vsyncpa [#allocation4 + $0x1], 1 }
 0x772   :  { %2536 = vsyncpa [#allocation5], 1 }
 0x773   :  { %2538 = vsyncpa [#allocation5 + $0x1], 1 }

</bundles_post_ra>
